<compile_context>
chip_gen: v7x
topology: tpu7x:2x2x1
jax: 0.10.0
libtpu: 0.0.40
codegen_flags: <defaults>
</compile_context>

<pallas_src>
import functools

import jax
import jax.numpy as jnp
from jax import lax
from jax.experimental import pallas as pl
from jax.experimental.pallas import tpu as pltpu


# Rows-per-matmul target.  256 matches the v6e/v7x MXU width; on v5e the
# 256-row tile simply becomes two MXU passes, which is still optimal.
_TARGET_M = 256

# Output lane quantum: head width is padded to a multiple of this so stores
# are unmasked and the writeback DMA is lane-dense.
_LANE = 128


# ---------------------------------------------------------------------------
# Pallas kernel: one grid step == one image of one feature level.
# ---------------------------------------------------------------------------
def _rpn_head_kernel(W, Th, n_tiles,
                     x_ref,    # (1, Hpad+2, W+2, C)   spatially padded NHWC image
                     w3_ref,   # (3, 3, C, Cmid)       3x3 conv weight (HWIO)
                     b3_ref,   # (1, Cmid)
                     wh_ref,   # (Cmid, Kp)            fused + padded 1x1 head weight
                     bh_ref,   # (1, Kp)               fused + padded 1x1 head bias
                     out_ref): # (1, Hpad*W, Kp)       fused output slab
    C = x_ref.shape[3]
    Cmid = w3_ref.shape[3]
    Kp = wh_ref.shape[1]
    M = Th * W                                     # MXU M dimension per tile

    # Hoist all loop-invariant loads / broadcasts out of the row-tile loop
    # (JAX does not CSE broadcast_in_dim, so do it once here).
    w3 = [[w3_ref[dy, dx] for dx in range(3)] for dy in range(3)]   # 9 x (C, Cmid)
    wh = wh_ref[...]                                                # (Cmid, Kp)
    b3 = jnp.broadcast_to(b3_ref[...], (M, Cmid))
    bh = jnp.broadcast_to(bh_ref[...], (M, Kp))

    @pl.loop(0, n_tiles)
    def _tile(ht):
        row0 = ht * Th
        x_tile = x_ref[0, pl.ds(row0, Th + 2)]     # (Th+2, W+2, C)

        # 3x3 conv as 9 shifted (M, C) @ (C, Cmid) matmuls, f32 accumulation.
        acc = None
        for dy in range(3):                        # static: only 3 taps
            rows = x_tile[dy:dy + Th]              # (Th, W+2, C)
            for dx in range(3):
                patch = rows[:, dx:dx + W, :].reshape(M, C)
                d = jnp.dot(patch, w3[dy][dx],
                            preferred_element_type=jnp.float32)
                acc = d if acc is None else acc + d
        hidden = jnp.maximum(acc + b3, 0.0)        # ReLU, (M, Cmid)

        # Fused objectness + anchor-delta heads: one matmul, one lane-dense
        # unmasked store of the whole (M, Kp) tile.
        out = jnp.dot(hidden, wh, preferred_element_type=jnp.float32) + bh
        start = pl.multiple_of(row0 * W, M)
        out_ref[0, pl.ds(start, M), :] = out.astype(out_ref.dtype)


# ---------------------------------------------------------------------------
# Wrapper for a single feature level (NCHW in / NCHW out, like PyTorch).
# ---------------------------------------------------------------------------
@functools.partial(jax.jit, static_argnames=("num_anchors", "box_dim"))
def rpn_head_level(x_nchw, kparams, *, num_anchors, box_dim):
    w3, b3, wh, bh = kparams
    N, C, H, W = x_nchw.shape
    Cmid = w3.shape[3]
    Kp = wh.shape[1]                              # padded head width (mult of 128)
    K = num_anchors * (1 + box_dim)               # real head width

    # Row-tile size: batch rows so each matmul has M = Th*W ~ _TARGET_M.
    Th = max(1, min(H, pl.cdiv(_TARGET_M, W)))
    n_tiles = pl.cdiv(H, Th)
    Hpad = n_tiles * Th

    # NCHW -> NHWC + zero pad for the 3x3 conv and the H round-up (glue).
    x = jnp.transpose(x_nchw, (0, 2, 3, 1))
    x_pad = jnp.pad(x, ((0, 0), (1, 1 + Hpad - H), (1, 1), (0, 0)))

    kernel = functools.partial(_rpn_head_kernel, W, Th, n_tiles)

    out = pl.pallas_call(
        kernel,
        out_shape=jax.ShapeDtypeStruct((N, Hpad * W, Kp), x.dtype),
        grid_spec=pltpu.PrefetchScalarGridSpec(
            num_scalar_prefetch=0,
            grid=(N,),
            in_specs=[
                pl.BlockSpec((1, Hpad + 2, W + 2, C), lambda n: (n, 0, 0, 0)),
                pl.BlockSpec((3, 3, C, Cmid), lambda n: (0, 0, 0, 0)),
                pl.BlockSpec((1, Cmid), lambda n: (0, 0)),
                pl.BlockSpec((Cmid, Kp), lambda n: (0, 0)),
                pl.BlockSpec((1, Kp), lambda n: (0, 0)),
            ],
            out_specs=pl.BlockSpec((1, Hpad * W, Kp), lambda n: (n, 0, 0)),
        ),
        compiler_params=pltpu.CompilerParams(
            dimension_semantics=("parallel",),
            vmem_limit_bytes=64 * 1024 * 1024),
    )(x_pad, w3, b3, wh, bh)

    # Un-fuse / un-flatten in the wrapper (pure layout plumbing, fused by jit).
    out = out.reshape(N, Hpad, W, Kp)[:, :H, :, :K]             # (N, H, W, K)
    obj = jnp.transpose(out[..., :num_anchors], (0, 3, 1, 2))   # (N, A, H, W)
    dlt = jnp.transpose(out[..., num_anchors:], (0, 3, 1, 2))   # (N, A*bd, H, W)
    return obj, dlt


def standard_rpn_head_forward(features, kparams, num_anchors, box_dim):
    """Mirrors StandardRPNHead.forward on a list of NCHW feature maps."""
    pred_objectness_logits = []
    pred_anchor_deltas = []
    for x in features:
        obj, dlt = rpn_head_level(x, kparams, num_anchors=num_anchors,
                                  box_dim=box_dim)
        pred_objectness_logits.append(obj)
        pred_anchor_deltas.append(dlt)
    return pred_objectness_logits, pred_anchor_deltas


# ---------------------------------------------------------------------------
# Deterministic parameter init (matches nn.init.normal_(std=0.01), bias = 0).
# ---------------------------------------------------------------------------
def init_params(key, in_channels, num_anchors, box_dim, conv_dim):
    k1, k2, k3 = jax.random.split(key, 3)
    # PyTorch OIHW layouts (also used for the pure-JAX reference check).
    w_conv_oihw = 0.01 * jax.random.normal(
        k1, (conv_dim, in_channels, 3, 3), jnp.float32)
    w_obj_oihw = 0.01 * jax.random.normal(
        k2, (num_anchors, conv_dim, 1, 1), jnp.float32)
    w_del_oihw = 0.01 * jax.random.normal(
        k3, (num_anchors * box_dim, conv_dim, 1, 1), jnp.float32)
    b_conv = jnp.zeros((conv_dim,), jnp.float32)
    b_obj = jnp.zeros((num_anchors,), jnp.float32)
    b_del = jnp.zeros((num_anchors * box_dim,), jnp.float32)

    torch_params = (w_conv_oihw, b_conv, w_obj_oihw, b_obj, w_del_oihw, b_del)

    # Kernel-friendly layouts: HWIO for the 3x3 conv; the two 1x1 heads are
    # fused into a single (Cmid, K) weight / (1, K) bias (objectness columns
    # first, then deltas) and zero-padded along K up to a multiple of 128 so
    # kernel output stores are unmasked and lane-dense.
    K = num_anchors * (1 + box_dim)
    Kp = pl.cdiv(K, _LANE) * _LANE
    w_obj_2d = jnp.transpose(w_obj_oihw[:, :, 0, 0], (1, 0))   # (Cmid, A)
    w_del_2d = jnp.transpose(w_del_oihw[:, :, 0, 0], (1, 0))   # (Cmid, A*bd)
    w_head = jnp.concatenate([w_obj_2d, w_del_2d], axis=1)     # (Cmid, K)
    w_head = jnp.pad(w_head, ((0, 0), (0, Kp - K)))            # (Cmid, Kp)
    b_head = jnp.pad(jnp.concatenate([b_obj, b_del]),
                     (0, Kp - K)).reshape(1, -1)                # (1, Kp)
    kparams = (
        jnp.transpose(w_conv_oihw, (2, 3, 1, 0)),               # (3, 3, C, Cmid)
        b_conv.reshape(1, -1),
        w_head,
        b_head,
    )
    return torch_params, kparams


# ---------------------------------------------------------------------------
# Pure-JAX (XLA conv) reference of the PyTorch forward, for verification.
# ---------------------------------------------------------------------------
def reference_forward(features, torch_params):
    w_conv, b_conv, w_obj, b_obj, w_del, b_del = torch_params
    dn = ("NCHW", "OIHW", "NCHW")
    objs, dels = [], []
    for x in features:
        t = lax.conv_general_dilated(x, w_conv, (1, 1), ((1, 1), (1, 1)),
                                     dimension_numbers=dn)
        t = jnp.maximum(t + b_conv[None, :, None, None], 0.0)
        obj = lax.conv_general_dilated(t, w_obj, (1, 1), ((0, 0), (0, 0)),
                                       dimension_numbers=dn)
        obj = obj + b_obj[None, :, None, None]
        dlt = lax.conv_general_dilated(t, w_del, (1, 1), ((0, 0), (0, 0)),
                                       dimension_numbers=dn)
        dlt = dlt + b_del[None, :, None, None]
        objs.append(obj)
        dels.append(dlt)
    return objs, dels


if __name__ == "__main__":
    in_channels = 4
    num_anchors = 3
    box_dim = 4
    conv_dim = in_channels        # conv_dims=(-1,) -> same as in_channels

    key = jax.random.PRNGKey(0)
    kx1, kx2, kx3, kp = jax.random.split(key, 4)

    # Three feature levels (like an FPN), NCHW as in PyTorch.
    #   level 0: 16x16 -> single row tile (M = 256)
    #   level 1:  8x8  -> small map, M = 64
    #   level 2: 24x16 -> exercises n_tiles = 2 and Hpad > H padding.
    features = [
        jax.random.normal(kx1, (2, in_channels, 16, 16), jnp.float32),
        jax.random.normal(kx2, (2, in_channels, 8, 8), jnp.float32),
        jax.random.normal(kx3, (2, in_channels, 24, 16), jnp.float32),
    ]

    torch_params, kparams = init_params(kp, in_channels, num_anchors,
                                        box_dim, conv_dim)

    objs, dels = standard_rpn_head_forward(features, kparams,
                                           num_anchors, box_dim)
    objs = [jax.block_until_ready(o) for o in objs]
    dels = [jax.block_until_ready(d) for d in dels]

    # Verify against the pure-JAX reference of the PyTorch module.
    ref_objs, ref_dels = reference_forward(features, torch_params)
    for o, ro in zip(objs, ref_objs):
        assert o.shape == ro.shape
        if not jnp.allclose(o, ro, atol=1e-5, rtol=1e-5):
            raise AssertionError("objectness logits mismatch")
    for d, rd in zip(dels, ref_dels):
        assert d.shape == rd.shape
        if not jnp.allclose(d, rd, atol=1e-5, rtol=1e-5):
            raise AssertionError("anchor deltas mismatch")

    print("KERNEL_OK")
</pallas_src>

<mosaic_0001>
module attributes {stable_mosaic.version = 11 : i64} {
  func.func @_rpn_head_kernel(%arg0: i32, %arg1: memref<1x18x18x4xf32, #tpu.memory_space<vmem>>, %arg2: memref<3x3x4x4xf32, #tpu.memory_space<vmem>>, %arg3: memref<1x4xf32, #tpu.memory_space<vmem>>, %arg4: memref<4x128xf32, #tpu.memory_space<vmem>>, %arg5: memref<1x128xf32, #tpu.memory_space<vmem>>, %arg6: memref<1x256x128xf32, #tpu.memory_space<vmem>>) attributes {dimension_semantics = [#tpu.dimension_semantics<parallel>], iteration_bounds = array<i64: 2>, scalar_prefetch = 0 : i64, scratch_operands = 0 : i64, tpu.core_type = #tpu.core_type<tc>, window_params = [{transform_indices = @transform_0, window_bounds = array<i64: 1, 18, 18, 4>}, {pipeline_mode = #tpu.pipeline_mode<synchronous>, transform_indices = @transform_1, window_bounds = array<i64: 3, 3, 4, 4>}, {pipeline_mode = #tpu.pipeline_mode<synchronous>, transform_indices = @transform_2, window_bounds = array<i64: 1, 4>}, {pipeline_mode = #tpu.pipeline_mode<synchronous>, transform_indices = @transform_3, window_bounds = array<i64: 4, 128>}, {pipeline_mode = #tpu.pipeline_mode<synchronous>, transform_indices = @transform_4, window_bounds = array<i64: 1, 128>}, {transform_indices = @transform_5, window_bounds = array<i64: 1, 256, 128>}]} {
    %c0 = arith.constant 0 : index
    %c0_0 = arith.constant 0 : index
    %c0_1 = arith.constant 0 : index
    %c0_2 = arith.constant 0 : index
    %0 = vector.load %arg2[%c0, %c0_0, %c0_1, %c0_2] : memref<3x3x4x4xf32, #tpu.memory_space<vmem>>, vector<1x1x4x4xf32>
    %1 = vector.shape_cast %0 : vector<1x1x4x4xf32> to vector<4x4xf32>
    %c0_3 = arith.constant 0 : index
    %c1 = arith.constant 1 : index
    %c0_4 = arith.constant 0 : index
    %c0_5 = arith.constant 0 : index
    %2 = vector.load %arg2[%c0_3, %c1, %c0_4, %c0_5] : memref<3x3x4x4xf32, #tpu.memory_space<vmem>>, vector<1x1x4x4xf32>
    %3 = vector.shape_cast %2 : vector<1x1x4x4xf32> to vector<4x4xf32>
    %c0_6 = arith.constant 0 : index
    %c2 = arith.constant 2 : index
    %c0_7 = arith.constant 0 : index
    %c0_8 = arith.constant 0 : index
    %4 = vector.load %arg2[%c0_6, %c2, %c0_7, %c0_8] : memref<3x3x4x4xf32, #tpu.memory_space<vmem>>, vector<1x1x4x4xf32>
    %5 = vector.shape_cast %4 : vector<1x1x4x4xf32> to vector<4x4xf32>
    %c1_9 = arith.constant 1 : index
    %c0_10 = arith.constant 0 : index
    %c0_11 = arith.constant 0 : index
    %c0_12 = arith.constant 0 : index
    %6 = vector.load %arg2[%c1_9, %c0_10, %c0_11, %c0_12] : memref<3x3x4x4xf32, #tpu.memory_space<vmem>>, vector<1x1x4x4xf32>
    %7 = vector.shape_cast %6 : vector<1x1x4x4xf32> to vector<4x4xf32>
    %c1_13 = arith.constant 1 : index
    %c1_14 = arith.constant 1 : index
    %c0_15 = arith.constant 0 : index
    %c0_16 = arith.constant 0 : index
    %8 = vector.load %arg2[%c1_13, %c1_14, %c0_15, %c0_16] : memref<3x3x4x4xf32, #tpu.memory_space<vmem>>, vector<1x1x4x4xf32>
    %9 = vector.shape_cast %8 : vector<1x1x4x4xf32> to vector<4x4xf32>
    %c1_17 = arith.constant 1 : index
    %c2_18 = arith.constant 2 : index
    %c0_19 = arith.constant 0 : index
    %c0_20 = arith.constant 0 : index
    %10 = vector.load %arg2[%c1_17, %c2_18, %c0_19, %c0_20] : memref<3x3x4x4xf32, #tpu.memory_space<vmem>>, vector<1x1x4x4xf32>
    %11 = vector.shape_cast %10 : vector<1x1x4x4xf32> to vector<4x4xf32>
    %c2_21 = arith.constant 2 : index
    %c0_22 = arith.constant 0 : index
    %c0_23 = arith.constant 0 : index
    %c0_24 = arith.constant 0 : index
    %12 = vector.load %arg2[%c2_21, %c0_22, %c0_23, %c0_24] : memref<3x3x4x4xf32, #tpu.memory_space<vmem>>, vector<1x1x4x4xf32>
    %13 = vector.shape_cast %12 : vector<1x1x4x4xf32> to vector<4x4xf32>
    %c2_25 = arith.constant 2 : index
    %c1_26 = arith.constant 1 : index
    %c0_27 = arith.constant 0 : index
    %c0_28 = arith.constant 0 : index
    %14 = vector.load %arg2[%c2_25, %c1_26, %c0_27, %c0_28] : memref<3x3x4x4xf32, #tpu.memory_space<vmem>>, vector<1x1x4x4xf32>
    %15 = vector.shape_cast %14 : vector<1x1x4x4xf32> to vector<4x4xf32>
    %c2_29 = arith.constant 2 : index
    %c2_30 = arith.constant 2 : index
    %c0_31 = arith.constant 0 : index
    %c0_32 = arith.constant 0 : index
    %16 = vector.load %arg2[%c2_29, %c2_30, %c0_31, %c0_32] : memref<3x3x4x4xf32, #tpu.memory_space<vmem>>, vector<1x1x4x4xf32>
    %17 = vector.shape_cast %16 : vector<1x1x4x4xf32> to vector<4x4xf32>
    %c0_33 = arith.constant 0 : index
    %c0_34 = arith.constant 0 : index
    %18 = vector.load %arg4[%c0_33, %c0_34] : memref<4x128xf32, #tpu.memory_space<vmem>>, vector<4x128xf32>
    %c0_35 = arith.constant 0 : index
    %c0_36 = arith.constant 0 : index
    %19 = vector.load %arg3[%c0_35, %c0_36] : memref<1x4xf32, #tpu.memory_space<vmem>>, vector<1x4xf32>
    %20 = vector.shape_cast %19 : vector<1x4xf32> to vector<1x4xf32>
    %21 = vector.broadcast %20 : vector<1x4xf32> to vector<256x4xf32>
    %c0_37 = arith.constant 0 : index
    %c0_38 = arith.constant 0 : index
    %22 = vector.load %arg5[%c0_37, %c0_38] : memref<1x128xf32, #tpu.memory_space<vmem>>, vector<1x128xf32>
    %23 = vector.shape_cast %22 : vector<1x128xf32> to vector<1x128xf32>
    %24 = vector.broadcast %23 : vector<1x128xf32> to vector<256x128xf32>
    %c0_i32 = arith.constant 0 : i32
    %c1_i32 = arith.constant 1 : i32
    %25 = arith.muli %c0_i32, %c1_i32 : i32
    %c0_i32_39 = arith.constant 0 : i32
    %26 = arith.addi %c0_i32_39, %25 : i32
    %c16_i32 = arith.constant 16 : i32
    %27 = arith.muli %26, %c16_i32 : i32
    %c0_40 = arith.constant 0 : index
    %28 = arith.index_cast %27 : i32 to index
    %c0_41 = arith.constant 0 : index
    %c0_42 = arith.constant 0 : index
    %29 = vector.load %arg1[%c0_40, %28, %c0_41, %c0_42] : memref<1x18x18x4xf32, #tpu.memory_space<vmem>>, vector<1x18x18x4xf32>
    %30 = vector.shape_cast %29 : vector<1x18x18x4xf32> to vector<18x18x4xf32>
    %31 = vector.extract_strided_slice %30 {offsets = [0, 0, 0], sizes = [16, 18, 4], strides = [1, 1, 1]} : vector<18x18x4xf32> to vector<16x18x4xf32>
    %32 = vector.extract_strided_slice %31 {offsets = [0, 0, 0], sizes = [16, 16, 4], strides = [1, 1, 1]} : vector<16x18x4xf32> to vector<16x16x4xf32>
    %33 = vector.shape_cast %32 : vector<16x16x4xf32> to vector<256x4xf32>
    %cst = arith.constant dense<0.000000e+00> : vector<256x4xf32>
    %34 = tpu.matmul %33, %1, %cst {dimension_numbers = #tpu.dot_dimension_numbers<[1], [0], [0], [1], [0, 0, 1, 1], [], []>} : vector<256x4xf32>, vector<4x4xf32>, vector<256x4xf32> -> vector<256x4xf32>
    %35 = vector.extract_strided_slice %31 {offsets = [0, 1, 0], sizes = [16, 16, 4], strides = [1, 1, 1]} : vector<16x18x4xf32> to vector<16x16x4xf32>
    %36 = vector.shape_cast %35 : vector<16x16x4xf32> to vector<256x4xf32>
    %cst_43 = arith.constant dense<0.000000e+00> : vector<256x4xf32>
    %37 = tpu.matmul %36, %3, %cst_43 {dimension_numbers = #tpu.dot_dimension_numbers<[1], [0], [0], [1], [0, 0, 1, 1], [], []>} : vector<256x4xf32>, vector<4x4xf32>, vector<256x4xf32> -> vector<256x4xf32>
    %38 = arith.addf %34, %37 : vector<256x4xf32>
    %39 = vector.extract_strided_slice %31 {offsets = [0, 2, 0], sizes = [16, 16, 4], strides = [1, 1, 1]} : vector<16x18x4xf32> to vector<16x16x4xf32>
    %40 = vector.shape_cast %39 : vector<16x16x4xf32> to vector<256x4xf32>
    %cst_44 = arith.constant dense<0.000000e+00> : vector<256x4xf32>
    %41 = tpu.matmul %40, %5, %cst_44 {dimension_numbers = #tpu.dot_dimension_numbers<[1], [0], [0], [1], [0, 0, 1, 1], [], []>} : vector<256x4xf32>, vector<4x4xf32>, vector<256x4xf32> -> vector<256x4xf32>
    %42 = arith.addf %38, %41 : vector<256x4xf32>
    %43 = vector.extract_strided_slice %30 {offsets = [1, 0, 0], sizes = [16, 18, 4], strides = [1, 1, 1]} : vector<18x18x4xf32> to vector<16x18x4xf32>
    %44 = vector.extract_strided_slice %43 {offsets = [0, 0, 0], sizes = [16, 16, 4], strides = [1, 1, 1]} : vector<16x18x4xf32> to vector<16x16x4xf32>
    %45 = vector.shape_cast %44 : vector<16x16x4xf32> to vector<256x4xf32>
    %cst_45 = arith.constant dense<0.000000e+00> : vector<256x4xf32>
    %46 = tpu.matmul %45, %7, %cst_45 {dimension_numbers = #tpu.dot_dimension_numbers<[1], [0], [0], [1], [0, 0, 1, 1], [], []>} : vector<256x4xf32>, vector<4x4xf32>, vector<256x4xf32> -> vector<256x4xf32>
    %47 = arith.addf %42, %46 : vector<256x4xf32>
    %48 = vector.extract_strided_slice %43 {offsets = [0, 1, 0], sizes = [16, 16, 4], strides = [1, 1, 1]} : vector<16x18x4xf32> to vector<16x16x4xf32>
    %49 = vector.shape_cast %48 : vector<16x16x4xf32> to vector<256x4xf32>
    %cst_46 = arith.constant dense<0.000000e+00> : vector<256x4xf32>
    %50 = tpu.matmul %49, %9, %cst_46 {dimension_numbers = #tpu.dot_dimension_numbers<[1], [0], [0], [1], [0, 0, 1, 1], [], []>} : vector<256x4xf32>, vector<4x4xf32>, vector<256x4xf32> -> vector<256x4xf32>
    %51 = arith.addf %47, %50 : vector<256x4xf32>
    %52 = vector.extract_strided_slice %43 {offsets = [0, 2, 0], sizes = [16, 16, 4], strides = [1, 1, 1]} : vector<16x18x4xf32> to vector<16x16x4xf32>
    %53 = vector.shape_cast %52 : vector<16x16x4xf32> to vector<256x4xf32>
    %cst_47 = arith.constant dense<0.000000e+00> : vector<256x4xf32>
    %54 = tpu.matmul %53, %11, %cst_47 {dimension_numbers = #tpu.dot_dimension_numbers<[1], [0], [0], [1], [0, 0, 1, 1], [], []>} : vector<256x4xf32>, vector<4x4xf32>, vector<256x4xf32> -> vector<256x4xf32>
    %55 = arith.addf %51, %54 : vector<256x4xf32>
    %56 = vector.extract_strided_slice %30 {offsets = [2, 0, 0], sizes = [16, 18, 4], strides = [1, 1, 1]} : vector<18x18x4xf32> to vector<16x18x4xf32>
    %57 = vector.extract_strided_slice %56 {offsets = [0, 0, 0], sizes = [16, 16, 4], strides = [1, 1, 1]} : vector<16x18x4xf32> to vector<16x16x4xf32>
    %58 = vector.shape_cast %57 : vector<16x16x4xf32> to vector<256x4xf32>
    %cst_48 = arith.constant dense<0.000000e+00> : vector<256x4xf32>
    %59 = tpu.matmul %58, %13, %cst_48 {dimension_numbers = #tpu.dot_dimension_numbers<[1], [0], [0], [1], [0, 0, 1, 1], [], []>} : vector<256x4xf32>, vector<4x4xf32>, vector<256x4xf32> -> vector<256x4xf32>
    %60 = arith.addf %55, %59 : vector<256x4xf32>
    %61 = vector.extract_strided_slice %56 {offsets = [0, 1, 0], sizes = [16, 16, 4], strides = [1, 1, 1]} : vector<16x18x4xf32> to vector<16x16x4xf32>
    %62 = vector.shape_cast %61 : vector<16x16x4xf32> to vector<256x4xf32>
    %cst_49 = arith.constant dense<0.000000e+00> : vector<256x4xf32>
    %63 = tpu.matmul %62, %15, %cst_49 {dimension_numbers = #tpu.dot_dimension_numbers<[1], [0], [0], [1], [0, 0, 1, 1], [], []>} : vector<256x4xf32>, vector<4x4xf32>, vector<256x4xf32> -> vector<256x4xf32>
    %64 = arith.addf %60, %63 : vector<256x4xf32>
    %65 = vector.extract_strided_slice %56 {offsets = [0, 2, 0], sizes = [16, 16, 4], strides = [1, 1, 1]} : vector<16x18x4xf32> to vector<16x16x4xf32>
    %66 = vector.shape_cast %65 : vector<16x16x4xf32> to vector<256x4xf32>
    %cst_50 = arith.constant dense<0.000000e+00> : vector<256x4xf32>
    %67 = tpu.matmul %66, %17, %cst_50 {dimension_numbers = #tpu.dot_dimension_numbers<[1], [0], [0], [1], [0, 0, 1, 1], [], []>} : vector<256x4xf32>, vector<4x4xf32>, vector<256x4xf32> -> vector<256x4xf32>
    %68 = arith.addf %64, %67 : vector<256x4xf32>
    %69 = arith.addf %68, %21 : vector<256x4xf32>
    %cst_51 = arith.constant 0.000000e+00 : f32
    %70 = vector.broadcast %cst_51 : f32 to vector<256x4xf32>
    %71 = arith.maximumf %69, %70 : vector<256x4xf32>
    %cst_52 = arith.constant dense<0.000000e+00> : vector<256x128xf32>
    %72 = tpu.matmul %71, %18, %cst_52 {dimension_numbers = #tpu.dot_dimension_numbers<[1], [0], [0], [1], [0, 0, 1, 1], [], []>} : vector<256x4xf32>, vector<4x128xf32>, vector<256x128xf32> -> vector<256x128xf32>
    %73 = arith.addf %72, %24 : vector<256x128xf32>
    %c16_i32_53 = arith.constant 16 : i32
    %74 = arith.muli %27, %c16_i32_53 : i32
    %75 = tpu.assume_multiple %74, 256 : i32
    %c0_54 = arith.constant 0 : index
    %76 = arith.index_cast %75 : i32 to index
    %c0_55 = arith.constant 0 : index
    %77 = vector.load %arg6[%c0_54, %76, %c0_55] : memref<1x256x128xf32, #tpu.memory_space<vmem>>, vector<1x256x128xf32>
    %78 = vector.shape_cast %77 : vector<1x256x128xf32> to vector<256x128xf32>
    %79 = vector.shape_cast %73 : vector<256x128xf32> to vector<1x256x128xf32>
    tpu.vector_store %arg6[%c0_54, %76, %c0_55], %79 {strides = array<i32>} : memref<1x256x128xf32, #tpu.memory_space<vmem>>, vector<1x256x128xf32>,
    %c1_i32_56 = arith.constant 1 : i32
    return
  }
  func.func @transform_0(%arg0: i32) -> (i32, i32, i32, i32) {
    %c0_i32 = arith.constant 0 : i32
    %c0_i32_0 = arith.constant 0 : i32
    %c0_i32_1 = arith.constant 0 : i32
    %c0_i32_2 = arith.constant 0 : i32
    return %arg0, %c0_i32, %c0_i32_0, %c0_i32_1 : i32, i32, i32, i32
  }
  func.func @transform_1(%arg0: i32) -> (i32, i32, i32, i32) {
    %c0_i32 = arith.constant 0 : i32
    %c0_i32_0 = arith.constant 0 : i32
    %c0_i32_1 = arith.constant 0 : i32
    %c0_i32_2 = arith.constant 0 : i32
    %c0_i32_3 = arith.constant 0 : i32
    return %c0_i32, %c0_i32_0, %c0_i32_1, %c0_i32_2 : i32, i32, i32, i32
  }
  func.func @transform_2(%arg0: i32) -> (i32, i32) {
    %c0_i32 = arith.constant 0 : i32
    %c0_i32_0 = arith.constant 0 : i32
    %c0_i32_1 = arith.constant 0 : i32
    return %c0_i32, %c0_i32_0 : i32, i32
  }
  func.func @transform_3(%arg0: i32) -> (i32, i32) {
    %c0_i32 = arith.constant 0 : i32
    %c0_i32_0 = arith.constant 0 : i32
    %c0_i32_1 = arith.constant 0 : i32
    return %c0_i32, %c0_i32_0 : i32, i32
  }
  func.func @transform_4(%arg0: i32) -> (i32, i32) {
    %c0_i32 = arith.constant 0 : i32
    %c0_i32_0 = arith.constant 0 : i32
    %c0_i32_1 = arith.constant 0 : i32
    return %c0_i32, %c0_i32_0 : i32, i32
  }
  func.func @transform_5(%arg0: i32) -> (i32, i32, i32) {
    %c0_i32 = arith.constant 0 : i32
    %c0_i32_0 = arith.constant 0 : i32
    %c0_i32_1 = arith.constant 0 : i32
    return %arg0, %c0_i32, %c0_i32_0 : i32, i32, i32
  }
}

</mosaic_0001>

<bundles_post_ra>
// kernel: rpn_head_level.1
= control target key start
LH: loop header
LB: loop body
LE: loop exit
PB: predicated region body
PF: predicated region fallthrough
CT: control target
= control target key end

     0   :  { %10 = vsyncpa [#allocation3], 0  ;;  %s7000_s0 = inlined_call_operand.hbm [shape: f32[2,18,18,4], index: 0, kind: input, shape index: {}]   ;;  %s7001_s1 = inlined_call_operand.hbm [shape: f32[3,3,4,4], index: 1, kind: input, shape index: {}]   ;;  %s7002_s2 = inlined_call_operand.hbm [shape: f32[1,4], index: 2, kind: input, shape index: {}]   ;;  %s7003_s3 = inlined_call_operand.hbm [shape: f32[4,128], index: 3, kind: input, shape index: {}]   ;;  %s7004_s4 = inlined_call_operand.hbm [shape: f32[1,128], index: 4, kind: input, shape index: {}]   ;;  %s7005_s5 = inlined_call_operand.hbm [shape: f32[2,256,128], index: 5, kind: output, shape index: {}]  }
   0x1   :  { %12 = vsyncpa [#allocation3 + $0x1], 0 }
   0x2   :  { %13 = vsyncpa [#allocation6], 0 }
   0x3   :  { %14 = vsyncpa [#allocation9], 0 }
   0x4   :  { %15 = vsyncpa [#allocation4], 0 }
   0x5   :  { %17 = vsyncpa [#allocation4 + $0x1], 0  ;;  %s5450_s18 = smov 0   ;;  %s5452_s19 = smov 0  }
   0x6   :  { %s5454_s20 = smov 0   ;;  %s5456_s21 = smov 0  }
   0x7 LB: > { %s5471_s22 = sadd.s32 4294967295, %s5406_s21   ;;  %s3656_s23 = sadd.s32 4294967294, %s5406_s21   ;;  %s5406_s21 = sphi %s5456_s21, %s7183_s21   ;;  %s5402_s20 = sphi %s5454_s20, %s7182_s20   ;;  %s5398_s19 = sphi %s5452_s19, %s7181_s19   ;;  %s5394_s18 = sphi %s5450_s18, %s7180_s18  }
   0x8   : > { %p43_p0 = scmp.ne.s32.totalorder %s5398_s19, %s5394_s18  ;;  %p7006_p1 = scmp.eq.s32.totalorder %s5471_s22, 0 }
   0x9   : > { %p157_p3 = scmp.eq.s32.totalorder %s3656_s23, 1  ;;  %p3657_p5 = scmp.ge.s32.totalorder %s5406_s21, 1 }
   0xa   : > { %p5480_p4 = por %p7006_p1, %p43_p0  ;;  %p164_p7 = scmp.lt.s32.totalorder %s5406_s21, 3 }
   0xb   : > { %p5485_p6 = por %p157_p3, %p43_p0  ;;  %s5408_s27 = smov [#allocation5]  }
   0xc   : > { %s7068_s24 = scalar_select %p5480_p4, 1, 0 }
   0xd   : > { %s7069_s25 = scalar_select %p5485_p6, 1, 0 }
   0xe   : > { %p5490_p8 = pnand %p3657_p5, %p164_p7  ;;  %s176_s28 = sshll.u32 %s5408_s27, 4  ;;  %s5494_s28 = int_to_ptr.vmem [resolvable:$true] %s176_s28 }
   0xf   : > { %s5409_s30 = smov [#allocation8]   ;;  %s5410_s7 = smov [#allocation7]  }
  0x10   : > { %s7070_s26 = scalar_select %p5490_p8, 1, 0 }
  0x11   : > { %p5117_p9 = pneg %p5490_p8  ;;  %s201_s6 = sshll.u32 %s5409_s30, 4  ;;  %s5505_s6 = int_to_ptr.vmem [resolvable:$true] %s201_s6 }
  0x12   : > { %s5507_s8 = sshll.u32 %s5410_s7, 4  ;;  %s5190_s11 = scalar_lea.hbm %s7001_s1, 576  ;;  %s191_s8 = int_to_ptr.vmem [resolvable:$true] %s5507_s8 }
  0x13   : > { %p5501_p11 = pnand %p5117_p9, %p7006_p1  ;;  %p5191_p12 = scmp.ne.s32.totalorder %s7001_s1, %s5190_s11 }
  0x14   : > { %p5197_p5 = scmp.lt.u32.totalorder %s5190_s11, %s7001_s1 }
  0x15   : > { %p5517_p13 = pneg %p5501_p11 }
  0x17   : > { %p5193_p0 = pnand %p5517_p13, %p5191_p12 }
  0x19   : > { %p5194_p3 = pneg %p5193_p0 }
  0x1b   : > { %p5199_p7 = pnand %p5197_p5, %p5194_p3 }
  0x1d   : > { %5202 = shalt.err (!%p5199_p7)
}
  0x1e   : > { %s5203_s17 = scalar_lea.vmem %s5494_s28, 576  ;;  %p5211_p2 = scmp.lt.s32.totalorder %s5494_s28, %s5494_s28 }
  0x1f   : > { %p5204_p9 = scmp.ne.s32.totalorder %s5494_s28, %s5203_s17  ;;  %p5212_p6 = scmp.lt.s32.totalorder %s5203_s17, %s5203_s17 }
  0x21   : > { %p5206_p10 = pnand %p5204_p9, %p5517_p13  ;;  %p5213_p12 = por %p5212_p6, %p5211_p2 }
  0x23   : > { %p5207_p1 = pneg %p5206_p10 }
  0x25   : > { %p5214_p0 = pnand %p5213_p12, %p5207_p1 }
  0x27   : > { %5217 = shalt.err (!%p5214_p0)
}
  0x28   : > { %s5411_s23 = smov 64   ;;  %s5412_s27 = smov 4  }
  0x29   : > { %5120 = dma.hbm_to_vmem [thread:$0]  (!%p5501_p11), %s7001_s1, 576, %s5494_s28, [#allocation6], %s5411_s23, %s5411_s23, %s5412_s27  }
  0x2a   : > { %s5218_s11 = scalar_lea.hbm %s7003_s3, 64 }
  0x2b   : > { %p5219_p2 = scmp.ne.s32.totalorder %s7003_s3, %s5218_s11  ;;  %p5225_p10 = scmp.lt.u32.totalorder %s5218_s11, %s7003_s3 }
  0x2d   : > { %p5221_p1 = pnand %p5219_p2, %p5517_p13 }
  0x2f   : > { %p5222_p6 = pneg %p5221_p1 }
  0x31   : > { %p5227_p3 = pnand %p5225_p10, %p5222_p6 }
  0x33   : > { %5230 = shalt.err (!%p5227_p3)
}
  0x34   : > { %s5231_s28 = scalar_lea.vmem %s5505_s6, 64  ;;  %p5239_p12 = scmp.lt.s32.totalorder %s5505_s6, %s5505_s6 }
  0x35   : > { %p5232_p5 = scmp.ne.s32.totalorder %s5505_s6, %s5231_s28  ;;  %p5240_p0 = scmp.lt.s32.totalorder %s5231_s28, %s5231_s28 }
  0x37   : > { %p5234_p7 = pnand %p5232_p5, %p5517_p13  ;;  %p5241_p2 = por %p5240_p0, %p5239_p12 }
  0x39   : > { %p5235_p9 = pneg %p5234_p7 }
  0x3b   : > { %p5242_p1 = pnand %p5241_p2, %p5235_p9 }
  0x3d   : > { %5245 = shalt.err (!%p5242_p1)
}
  0x3e   : > { %5126 = dma.hbm_to_vmem [thread:$0]  (!%p5501_p11), %s7003_s3, 64, %s5505_s6, [#allocation9]  }
  0x3f   : > { %s5246_s7 = scalar_lea.hbm %s7002_s2, 16 }
  0x40   : > { %p5247_p6 = scmp.ne.s32.totalorder %s7002_s2, %s5246_s7  ;;  %p5253_p5 = scmp.lt.u32.totalorder %s5246_s7, %s7002_s2 }
  0x42   : > { %p5249_p10 = pnand %p5247_p6, %p5517_p13 }
  0x44   : > { %p5250_p3 = pneg %p5249_p10 }
  0x46   : > { %p5255_p7 = pnand %p5253_p5, %p5250_p3 }
  0x48   : > { %5258 = shalt.err (!%p5255_p7)
}
  0x49   : > { %s5259_s13 = scalar_lea.vmem %s191_s8, 16  ;;  %s5266_s6 = scalar_lea.vmem %s191_s8, 32 }
  0x4a   : > { %p5260_p9 = scmp.ne.s32.totalorder %s191_s8, %s5259_s13  ;;  %p5267_p2 = scmp.lt.s32.totalorder %s191_s8, %s191_s8 }
  0x4b   : > { %p5268_p1 = scmp.lt.s32.totalorder %s5266_s6, %s5259_s13 }
  0x4c   : > { %p5262_p12 = pnand %p5260_p9, %p5517_p13 }
  0x4d   : > { %p5269_p4 = por %p5268_p1, %p5267_p2 }
  0x4e   : > { %p5263_p0 = pneg %p5262_p12 }
  0x50   : > { %p5270_p8 = pnand %p5269_p4, %p5263_p0 }
  0x52   : > { %5273 = shalt.err (!%p5270_p8)
}
  0x53   : > { %5123 = dma.hbm_to_vmem [thread:$0]  (!%p5501_p11), %s7002_s2, 16, %s191_s8, [#allocation6]  }
  0x54   : > { %s5413_s28 = smov [#allocation10]   ;;  %s5274_s30 = scalar_lea.hbm %s7004_s4, 16 }
  0x55   : > { %s212_s17 = sshll.u32 %s5413_s28, 4  ;;  %p5275_p6 = scmp.ne.s32.totalorder %s7004_s4, %s5274_s30  ;;  %s213_s17 = int_to_ptr.vmem [resolvable:$true] %s212_s17 }
  0x56   : > { %p5281_p10 = scmp.lt.u32.totalorder %s5274_s30, %s7004_s4 }
  0x57   : > { %p5277_p4 = pnand %p5275_p6, %p5517_p13 }
  0x59   : > { %p5278_p8 = pneg %p5277_p4 }
  0x5b   : > { %p5283_p3 = pnand %p5281_p10, %p5278_p8 }
  0x5d   : > { %5286 = shalt.err (!%p5283_p3)
}
  0x5e   : > { %s5287_s8 = scalar_lea.vmem %s213_s17, 16  ;;  %s5294_s12 = scalar_lea.vmem %s213_s17, 32 }
  0x5f   : > { %p5288_p5 = scmp.ne.s32.totalorder %s213_s17, %s5287_s8  ;;  %p5295_p12 = scmp.lt.s32.totalorder %s213_s17, %s213_s17 }
  0x60   : > { %p5296_p0 = scmp.lt.s32.totalorder %s5294_s12, %s5287_s8 }
  0x61   : > { %p5290_p7 = pnand %p5288_p5, %p5517_p13 }
  0x62   : > { %p5297_p2 = por %p5296_p0, %p5295_p12 }
  0x63   : > { %p5291_p9 = pneg %p5290_p7 }
  0x65   : > { %p5298_p1 = pnand %p5297_p2, %p5291_p9 }
  0x67   : > { %5301 = shalt.err (!%p5298_p1)
}
  0x68   : > { %5129 = dma.hbm_to_vmem [thread:$0]  (!%p5501_p11), %s7004_s4, 16, %s213_s17, [#allocation9]  }
  0x69   : > { %s5599_s14 = sadd.s32 1, %s5406_s21   ;;  %s30_s15 = sadd.s32 1, %s5402_s20 }
  0x6a   : > { %s27_s29 = ssub.s32 %s5406_s21, %s5599_s14  ;;  %p37_p13 = scmp.ne.s32.totalorder %s5402_s20, %s5398_s19 }
  0x6b   : > { %p28_p6 = scmp.eq.s32.totalorder %s27_s29, 0  ;;  %p38_p4 = scmp.eq.s32.totalorder %s5406_s21, 0 }
  0x6c   : > { %p7073_p8 = scmp.eq.s32.totalorder %s5471_s22, 1  ;;  %p5142_p3 = scmp.lt.s32.totalorder %s5406_s21, 2 }
  0x6d   : > { %s5615_s28 = scalar_select %p28_p6, %s5402_s20, %s30_s15  }
  0x6e   : > { %p5609_p10 = por %p7073_p8, %p37_p13  ;;  %p39_p5 = por %p38_p4, %p37_p13 }
  0x6f   : > { %s223_s23 = sand.u32 1, %s5402_s20   ;;  %s5095_s17 = smul.u32 6912, %s5406_s21 }
  0x70   : > { %s5094_s27 = smul.u32 432, %s223_s23  ;;  %p5619_p11 = pnand %p5142_p3, %p39_p5 }
  0x71   : > { %s5626_s10 = scalar_lea.hbm %s7000_s0, %s5095_s17  ;;  %s5630_s12 = scalar_lea.sflag [#allocation3], %s223_s23 }
  0x72   : > { %s227_s11 = scalar_lea.vmem [#allocation2], %s5094_s27  ;;  %s5302_s13 = scalar_lea.hbm %s5626_s10, 6912 }
  0x73   : > { %s234_s8 = sshll.u32 %s227_s11, 4  ;;  %p5303_p7 = scmp.ne.s32.totalorder %s5626_s10, %s5302_s13  ;;  %s5628_s8 = int_to_ptr.vmem [resolvable:$true] %s234_s8 }
  0x74   : > { %p5304_p9 = pneg %p5619_p11  ;;  %s5307_s29 = scalar_lea.hbm %s7000_s0, 13824 }
  0x75   : > { %p5308_p2 = scmp.lt.u32.totalorder %s5626_s10, %s7000_s0  ;;  %p5309_p1 = scmp.lt.u32.totalorder %s5307_s29, %s5302_s13 }
  0x76   : > { %p5305_p12 = pnand %p5304_p9, %p5303_p7  ;;  %p5311_p6 = scmp.lt.u32.totalorder %s5302_s13, %s5626_s10 }
  0x77   : > { %p5310_p13 = por %p5309_p1, %p5308_p2 }
  0x78   : > { %p5306_p0 = pneg %p5305_p12 }
  0x79   : > { %p5312_p4 = por %p5311_p6, %p5310_p13 }
  0x7b   : > { %p5313_p8 = pnand %p5312_p4, %p5306_p0 }
  0x7d   : > { %5316 = shalt.err (!%p5313_p8)
}
  0x7e   : > { %s5317_s23 = scalar_lea.vmem %s5628_s8, 6912  ;;  %s5414_s27 = smov [#allocation2]  }
  0x7f   : > { %p5318_p3 = scmp.ne.s32.totalorder %s5628_s8, %s5317_s23  ;;  %s5322_s9 = sshll.u32 %s5414_s27, 4  ;;  %s5323_s9 = int_to_ptr.vmem [resolvable:$false] %s5322_s9 }
  0x80   : > { %s5324_s11 = scalar_lea.vmem %s5323_s9, 13824  ;;  %p5325_p12 = scmp.lt.s32.totalorder %s5628_s8, %s5323_s9 }
  0x81   : > { %p5320_p5 = pnand %p5318_p3, %p5304_p9  ;;  %p5326_p2 = scmp.lt.s32.totalorder %s5324_s11, %s5317_s23 }
  0x83   : > { %p5321_p7 = pneg %p5320_p5  ;;  %p5327_p1 = por %p5326_p2, %p5325_p12 }
  0x85   : > { %p5328_p13 = pnand %p5327_p1, %p5321_p7 }
  0x87   : > { %5331 = shalt.err (!%p5328_p13)
}
  0x88   : > { %s5415_s13 = smov 128   ;;  %s5416_s6 = smov 8  }
  0x89   : > { %5133 = dma.hbm_to_vmem [thread:$0]  (!%p5619_p11), %s5626_s10, 6912, %s5628_s8, %s5630_s12, %s5415_s13, %s5415_s13, %s5416_s6  }
  0x8a   : > { %p7076_p9 = scmp.ne.s32.totalorder %s7070_s26, 0 }
  0x8c   : > { %246 = sbr.rel (%p7076_p9) target bundleno = 933 (0x3a5), region = 40 }
  0x93   : > { %s5661_s15 = sand.u32 1, %s5398_s19   ;;  %p7077_p0 = scmp.ne.s32.totalorder %s7068_s24, 0 }
  0x94   : > { %s5096_s29 = smul.u32 432, %s5661_s15  ;;  %s249_s17 = scalar_lea.sflag [#allocation3], %s5661_s15 }
  0x96   : > { %s5665_s7 = scalar_lea.vmem [#allocation2], %s5096_s29 }
  0x97   : > { %5377 = dma.done.wait (%p7077_p0), %s249_s17, 6912  }
  0x98   : > { %5379 = vsyncadd (%p7077_p0), %s249_s17, 4294960384  ;;  %p7078_p11 = scmp.eq.s32.totalorder %s5471_s22, 0 }
  0x9a   : > { %5381 = dma.done.wait (%p7078_p11), [#allocation6], 592   ;;  %p7079_p6 = pmov %p7078_p11 }
  0x9c   : > { %5383 = vsyncadd (%p7079_p6), [#allocation6], 4294966704  ;;  %p7080_p4 = pmov %p7079_p6 }
  0x9e   : > { %5385 = dma.done.wait (%p7080_p4), [#allocation9], 80   ;;  %p7081_p8 = pmov %p7080_p4 }
  0x9f   : > { %vm575_vm0 = vcmask 1043456   ;;  %v303_v0 = vld [vmem:[#allocation5 + $0x10] sm:$0xf]  ;;  %v297_v1 = vld [vmem:[#allocation5 + $0x4] sm:$0xf]  ;;  %v5685_v3 = vld [vmem:[%s5665_s7 + $0x8] sm:$0xff] }
  0xa0   : > { %5387 = vsyncadd (%p7081_p8), [#allocation9], 4294967216  ;;  %v5680_v2 = vld [vmem:[%s5665_s7] sm:$0xff]  ;;  %4538 = vmatprep.subr.msk.mxu0 %vm575_vm0, %v303_v0  ;;  %4338 = vmatprep.subr.msk.mxu1 %vm575_vm0, %v297_v1  ;;  %vm429_vm1 = vcmask 1046528   ;;  %vm510_vm2 = vcmask 31744   ;;  %v5689_v5 = vld [vmem:[%s5665_s7 + $0x18] sm:$0xff] }
  0xa1   : > { %v430_v4 = vrot.slane %v5680_v2, 1  ;;  %7082 = vst [vmem:[#allocation16_spill] sm:$0xff] %v5689_v5  ;;  %v5692_v6 = vld [vmem:[%s5665_s7 + $0x20] sm:$0xff]  ;;  %4539 = vmatpush3.msk.msra.mxu0 %vm575_vm0, %v303_v0  ;;  %4339 = vmatpush3.msk.msra.mxu1 %vm575_vm0, %v297_v1  ;;  %v431_v7 = vrot.slane %v5685_v3, 1  ;;  %v435_v8 = vrot.slane %v5689_v5, 1  ;;  %v5700_v11 = vld [vmem:[%s5665_s7 + $0x30] sm:$0xff] }
  0xa2   : > { %7083 = vst [vmem:[#allocation17_spill] sm:$0xff] %v5692_v6  ;;  %v436_v9 = vrot.slane %v5692_v6, 1  ;;  %v305_v10 = vld [vmem:[#allocation5 + $0x14] sm:$0xf]  ;;  %v5704_v12 = vld [vmem:[%s5665_s7 + $0x10] sm:$0x3] }
  0xa3   : > { %4588 = vmatprep.subr.msk.mxu0 %vm575_vm0, %v305_v10  ;;  %7084 = vst [vmem:[#allocation18_spill] sm:$0xff] %v5704_v12  ;;  %v5707_v13 = vld [vmem:[%s5665_s7 + $0x28] sm:$0x3]  ;;  %v5710_v14 = vld [vmem:[%s5665_s7 + $0x38] sm:$0xff]  ;;  %v440_v15 = vrot.slane %v5700_v11, 1  ;;  %v432_v16 = vsel %vm429_vm1, %v430_v4, %v431_v7  ;;  %v433_v18 = vrot.slane %v5704_v12, 1 }
  0xa4   : > { %v437_v17 = vsel %vm429_vm1, %v435_v8, %v436_v9  ;;  %v5717_v19 = vld [vmem:[%s5665_s7 + $0x40] sm:$0x3]  ;;  %v5720_v20 = vld [vmem:[%s5665_s7 + $0x48] sm:$0xff]  ;;  %v5723_v21 = vld [vmem:[%s5665_s7 + $0x50] sm:$0xff]  ;;  %4340 = vmatprep.mubr.msk.f32.mxu1 %vm510_vm2, %v432_v16  ;;  %v438_v22 = vrot.slane %v5707_v13, 1  ;;  %v441_v23 = vrot.slane %v5710_v14, 1 }
  0xa5   : > { %4540 = vmatprep.mubr.msk.f32.mxu0 %vm510_vm2, %v437_v17  ;;  %v443_v24 = vrot.slane %v5717_v19, 1  ;;  %v434_v25 = vsel %vm429_vm1, %v431_v7, %v433_v18  ;;  %v445_v26 = vrot.slane %v5720_v20, 1  ;;  %v446_v27 = vrot.slane %v5723_v21, 1  ;;  %v5734_v28 = vld [vmem:[%s5665_s7 + $0x58] sm:$0x3]  ;;  %v5742_v31 = vld [vmem:[%s5665_s7 + $0x60] sm:$0xff] }
  0xa6   : > { %4341 = vmatmul.mubr.msk.f32.vlgmr.msra.gmra.mrb[0].mxu1 %vm510_vm2, %v434_v25  ;;  %v439_v29 = vsel %vm429_vm1, %v436_v9, %v438_v22  ;;  %v5739_v30 = vsel %vm429_vm1, %v440_v15, %v441_v23  ;;  %v5745_v32 = vld [vmem:[%s5665_s7 + $0x68] sm:$0xff]  ;;  %v448_v34 = vrot.slane %v5734_v28, 1  ;;  %v450_v36 = vrot.slane %v5742_v31, 1  ;;  %v5762_v38 = vld [vmem:[%s5665_s7 + $0x70] sm:$0x3]  ;;  %v5766_v39 = vld [vmem:[%s5665_s7 + $0x78] sm:$0xff] }
  0xa7   : > { %7085 = vst [vmem:[#allocation19_spill] sm:$0xff] %v5739_v30  ;;  %4541 = vmatmul.mubr.msk.f32.vlgmr.msra.gmra.mrb[0].mxu0 %vm510_vm2, %v439_v29  ;;  %4343 = vmatprep.mubr.msk.f32.mxu1 %vm510_vm2, %v437_v17  ;;  %v5753_v33 = vsel %vm429_vm1, %v441_v23, %v443_v24  ;;  %v5757_v35 = vsel %vm429_vm1, %v445_v26, %v446_v27  ;;  %v451_v37 = vrot.slane %v5745_v32, 1  ;;  %v5769_v40 = vld [vmem:[%s5665_s7 + $0x80] sm:$0xff]  ;;  %v453_v42 = vrot.slane %v5762_v38, 1  ;;  %v5787_v46 = vld [vmem:[%s5665_s7 + $0x88] sm:$0x3] }
  0xa8   : > { %4589 = vmatpush3.msk.msra.mxu0 %vm575_vm0, %v305_v10  ;;  %4543 = vmatprep.mubr.msk.f32.mxu0 %vm510_vm2, %v5739_v30  ;;  %7086 = vst [vmem:[#allocation20_spill] sm:$0xff] %v5753_v33  ;;  %7087 = vst [vmem:[#allocation21_spill] sm:$0xff] %v5757_v35  ;;  %v5778_v41 = vsel %vm429_vm1, %v446_v27, %v448_v34  ;;  %v455_v44 = vrot.slane %v5766_v39, 1  ;;  %v456_v45 = vrot.slane %v5769_v40, 1  ;;  %v5792_v47 = vld [vmem:[%s5665_s7 + $0x90] sm:$0xff]  ;;  %v5795_v48 = vld [vmem:[%s5665_s7 + $0x98] sm:$0xff] }
  0xa9   : > { %7088 = vst [vmem:[#allocation22_spill] sm:$0xff] %v5778_v41  ;;  %v5782_v43 = vsel %vm429_vm1, %v450_v36, %v451_v37  ;;  %v5804_v49 = vsel %vm429_vm1, %v451_v37, %v453_v42  ;;  %v458_v50 = vrot.slane %v5787_v46, 1  ;;  %v460_v52 = vrot.slane %v5792_v47, 1  ;;  %v5813_v54 = vld [vmem:[%s5665_s7 + $0xa0] sm:$0x3]  ;;  %v5818_v55 = vld [vmem:[%s5665_s7 + $0xa8] sm:$0xff] }
  0xaa   : > { %4344 = vmatmul.mubr.msk.f32.gmra.mrb[2].mxu1 %vm510_vm2, %v439_v29  ;;  %7089 = vst [vmem:[#allocation23_spill] sm:$0xff] %v5782_v43  ;;  %7090 = vst [vmem:[#allocation24_spill] sm:$0xff] %v5804_v49  ;;  %v5808_v51 = vsel %vm429_vm1, %v455_v44, %v456_v45  ;;  %v461_v53 = vrot.slane %v5795_v48, 1  ;;  %v5821_v56 = vld [vmem:[%s5665_s7 + $0xb0] sm:$0xff]  ;;  %v463_v59 = vrot.slane %v5813_v54, 1  ;;  %v465_v63 = vrot.slane %v5818_v55, 1 }
  0xab   : > { %4544 = vmatmul.mubr.msk.f32.gmra.mrb[2].mxu0 %vm510_vm2, %v5753_v33  ;;  %4346 = vmatprep.mubr.msk.f32.mxu1 %vm510_vm2, %v5739_v30  ;;  %7091 = vst [vmem:[#allocation25_spill] sm:$0xff] %v5808_v51  ;;  %v295_v57 = vld [vmem:[#allocation5] sm:$0xf]  ;;  %v5830_v58 = vsel %vm429_vm1, %v456_v45, %v458_v50  ;;  %v5834_v60 = vld [vmem:[#allocation5 + $0x18] sm:$0xf]  ;;  %v466_v0 = vrot.slane %v5821_v56, 1 }
  0xac   : > { %4546 = vmatprep.mubr.msk.f32.mxu0 %vm510_vm2, %v5757_v35  ;;  %7092 = vst [vmem:[#allocation26_spill] sm:$0xff] %v5830_v58  ;;  %4388 = vmatprep.subr.msk.mxu1 %vm575_vm0, %v295_v57  ;;  %v5836_v61 = vld [vmem:[#allocation5 + $0x8] sm:$0xf]  ;;  %v5839_v62 = vsel %vm429_vm1, %v460_v52, %v461_v53  ;;  %v5852_v4 = vld [vmem:[%s5665_s7 + $0xc0] sm:$0xff]  ;;  %v5866_v8 = vsel %vm429_vm1, %v461_v53, %v463_v59  ;;  %v5875_v17 = vld [vmem:[%s5665_s7 + $0xd0] sm:$0x3] }
  0xad   : > { %7093 = vst [vmem:[#allocation27_spill] sm:$0xff] %v5839_v62  ;;  %v5844_v1 = vld [vmem:[%s5665_s7 + $0xb8] sm:$0x3]  ;;  %4389 = vmatpush3.msk.msra.mxu1 %vm575_vm0, %v295_v57  ;;  %4638 = vmatprep.subr.msk.mxu0 %vm575_vm0, %v5834_v60  ;;  %v5855_v7 = vld [vmem:[%s5665_s7 + $0xc8] sm:$0xff]  ;;  %7094 = vst [vmem:[#allocation28_spill] sm:$0xff] %v5866_v8  ;;  %v5870_v10 = vsel %vm429_vm1, %v465_v63, %v466_v0  ;;  %v470_v15 = vrot.slane %v5852_v4, 1 }
  0xae   : > { %4347 = vmatmul.mubr.msk.f32.gmra.mrb[4].mxu1 %vm510_vm2, %v5753_v33  ;;  %4438 = vmatprep.subr.msk.mxu1 %vm575_vm0, %v5836_v61  ;;  %v468_v9 = vrot.slane %v5844_v1, 1  ;;  %7095 = vst [vmem:[#allocation29_spill] sm:$0xff] %v5870_v10  ;;  %v471_v16 = vrot.slane %v5855_v7, 1  ;;  %v5880_v18 = vld [vmem:[%s5665_s7 + $0xd8] sm:$0xff]  ;;  %v5883_v22 = vld [vmem:[%s5665_s7 + $0xe0] sm:$0xff]  ;;  %v473_v24 = vrot.slane %v5875_v17, 1 }
  0xaf   : > { %4547 = vmatmul.mubr.msk.f32.gmra.mrb[4].mxu0 %vm510_vm2, %v5778_v41  ;;  %4349 = vmatprep.mubr.msk.f32.mxu1 %vm510_vm2, %v5757_v35  ;;  %v475_v26 = vrot.slane %v5880_v18, 1  ;;  %v476_v27 = vrot.slane %v5883_v22, 1  ;;  %v5901_v29 = vld [vmem:[%s5665_s7 + $0xe8] sm:$0x3]  ;;  %v5906_v34 = vld [vmem:[%s5665_s7 + $0xf0] sm:$0xff]  ;;  %v5909_v36 = vld [vmem:[%s5665_s7 + $0xf8] sm:$0xff] }
  0xb0   : > { %4549 = vmatprep.mubr.msk.f32.mxu0 %vm510_vm2, %v5782_v43  ;;  %v5892_v23 = vsel %vm429_vm1, %v466_v0, %v468_v9  ;;  %v5896_v25 = vsel %vm429_vm1, %v470_v15, %v471_v16  ;;  %v5918_v37 = vsel %vm429_vm1, %v471_v16, %v473_v24  ;;  %v478_v42 = vrot.slane %v5901_v29, 1  ;;  %v5927_v52 = vld [vmem:[%s5665_s7 + $0x100] sm:$0x3]  ;;  %v5932_v53 = vld [vmem:[%s5665_s7 + $0x108] sm:$0xff]  ;;  %v5935_v57 = vld [vmem:[%s5665_s7 + $0x110] sm:$0xff]  ;;  %s3669_s24 = sshll.u32 %s5661_s15, 8 }
  0xb1   : > { %7096 = vst [vmem:[#allocation30_spill] sm:$0xff] %v5892_v23  ;;  %7097 = vst [vmem:[#allocation31_spill] sm:$0xff] %v5896_v25  ;;  %v5922_v44 = vsel %vm429_vm1, %v475_v26, %v476_v27  ;;  %v480_v45 = vrot.slane %v5906_v34, 1  ;;  %v481_v50 = vrot.slane %v5909_v36, 1  ;;  %v483_v63 = vrot.slane %v5927_v52, 1  ;;  %v5958_v24 = vld [vmem:[%s5665_s7 + $0x120] sm:$0xff] }
  0xb2   : > { %4350 = vmatmul.mubr.msk.f32.gmra.mrb[6].mxu1 %vm510_vm2, %v5778_v41  ;;  %7098 = vst [vmem:[#allocation32_spill] sm:$0xff] %v5918_v37  ;;  %7099 = vst [vmem:[#allocation33_spill] sm:$0xff] %v5922_v44  ;;  %v5944_v59 = vsel %vm429_vm1, %v476_v27, %v478_v42  ;;  %v485_v9 = vrot.slane %v5932_v53, 1  ;;  %v486_v15 = vrot.slane %v5935_v57, 1  ;;  %v5953_v16 = vld [vmem:[%s5665_s7 + $0x118] sm:$0x3] }
  0xb3   : > { %4550 = vmatmul.mubr.msk.f32.gmra.mrb[6].mxu0 %vm510_vm2, %v5804_v49  ;;  %4352 = vmatprep.mubr.msk.f32.mxu1 %vm510_vm2, %v5782_v43  ;;  %7100 = vst [vmem:[#allocation34_spill] sm:$0xff] %v5944_v59  ;;  %v5948_v0 = vsel %vm429_vm1, %v480_v45, %v481_v50  ;;  %v5961_v26 = vld [vmem:[%s5665_s7 + $0x128] sm:$0xff]  ;;  %v5970_v27 = vsel %vm429_vm1, %v481_v50, %v483_v63  ;;  %v488_v42 = vrot.slane %v5953_v16, 1  ;;  %v5987_v50 = vld [vmem:[%s5665_s7 + $0x140] sm:$0xff]  ;;  %v6057_v35 = vld [vmem:[%s5665_s7 + $0x178] sm:$0x3] }
  0xb4   : > { %4552 = vmatprep.mubr.msk.f32.mxu0 %vm510_vm2, %v5808_v51  ;;  %7101 = vst [vmem:[#allocation35_spill] sm:$0xff] %v5948_v0  ;;  %7102 = vst [vmem:[#allocation36_spill] sm:$0xff] %v5970_v27  ;;  %v5974_v45 = vsel %vm429_vm1, %v485_v9, %v486_v15  ;;  %v6065_v33 = vld [vmem:[%s5665_s7 + $0x188] sm:$0xff]  ;;  %v6083_v12 = vld [vmem:[%s5665_s7 + $0x190] sm:$0x3]  ;;  %vm1096_vm3 = vcmask 1045504  }
  0xb5   : > { %7103 = vst [vmem:[#allocation37_spill] sm:$0xff] %v5974_v45  ;;  %v5996_v63 = vsel %vm429_vm1, %v486_v15, %v488_v42  ;;  %v6013_v15 = vld [vmem:[%s5665_s7 + $0x158] sm:$0xff]  ;;  %7111 = vst [vmem:[#allocation45_spill] sm:$0xff] %v6065_v33  ;;  %v1769_v30 = vrot.slane %v6065_v33, 1  ;;  %s6885_s26 = scalar_lea.vmem [#allocation11], %s3669_s24  ;;  %s4007_s30 = sshll.u32 %s5471_s22, 12 }
  0xb6   : > { %4353 = vmatmul.mubr.msk.f32.gmra.mrb[8].mxu1 %vm510_vm2, %v5804_v49  ;;  %7104 = vst [vmem:[#allocation38_spill] sm:$0xff] %v5996_v63  ;;  %v6031_v49 = vld [vmem:[%s5665_s7 + $0x160] sm:$0x3]  ;;  %s3545_s10 = sshll.u32 %s6885_s26, 4  ;;  %s6951_s23 = scalar_lea.hbm %s7005_s5, %s4007_s30  ;;  %s6953_s10 = int_to_ptr.vmem [resolvable:$true] %s3545_s10 }
  0xb7   : > { %4553 = vmatmul.mubr.msk.f32.gmra.mrb[8].mxu0 %vm510_vm2, %v5830_v58  ;;  %4355 = vmatprep.mubr.msk.f32.mxu1 %vm510_vm2, %v5808_v51  ;;  %v501_v51 = vrot.slane %v6013_v15, 1  ;;  %s3532_s22 = scalar_lea.sflag [#allocation4], %s5661_s15  ;;  %s5332_s27 = scalar_lea.vmem %s6953_s10, 4096 }
  0xb8   : > { %4555 = vmatprep.mubr.msk.f32.mxu0 %vm510_vm2, %v5839_v62  ;;  %p5333_p3 = scmp.ne.s32.totalorder %s6953_s10, %s5332_s27  ;;  %s5417_s9 = smov [#allocation11]  }
  0xb9   : > { %s5336_s11 = sshll.u32 %s5417_s9, 4  ;;  %s5337_s11 = int_to_ptr.vmem [resolvable:$false] %s5336_s11 }
  0xba   : > { %4356 = vmatmul.mubr.msk.f32.gmra.mrb[10].mxu1 %vm510_vm2, %v5830_v58  ;;  %p5334_p5 = pnand %p5333_p3, %p5609_p10  ;;  %s5338_s13 = scalar_lea.vmem %s5337_s11, 8192 }
  0xbb   : > { %4556 = vmatmul.mubr.msk.f32.gmra.mrb[10].mxu0 %vm510_vm2, %v5866_v8  ;;  %4358 = vmatprep.mubr.msk.f32.mxu1 %vm510_vm2, %v5839_v62  ;;  %v6005_v62 = vld [vmem:[%s5665_s7 + $0x148] sm:$0x3]  ;;  %p5339_p12 = scmp.lt.s32.totalorder %s6953_s10, %s5337_s11  ;;  %p5340_p2 = scmp.lt.s32.totalorder %s5338_s13, %s5332_s27 }
  0xbc   : > { %4558 = vmatprep.mubr.msk.f32.mxu0 %vm510_vm2, %v5870_v10  ;;  %v498_v42 = vrot.slane %v6005_v62, 1  ;;  %p5335_p7 = pneg %p5334_p5 }
  0xbd   : > { %p5341_p1 = por %p5340_p2, %p5339_p12 }
  0xbe   : > { %4359 = vmatmul.mubr.msk.f32.gmra.mrb[12].mxu1 %vm510_vm2, %v5866_v8  ;;  %v496_v8 = vrot.slane %v5987_v50, 1 }
  0xbf   : > { %4559 = vmatmul.mubr.msk.f32.gmra.mrb[12].mxu0 %vm510_vm2, %v5892_v23  ;;  %4361 = vmatprep.mubr.msk.f32.mxu1 %vm510_vm2, %v5870_v10  ;;  %p5342_p13 = pnand %p5341_p1, %p5335_p7 }
  0xc0   : > { %4561 = vmatprep.mubr.msk.f32.mxu0 %vm510_vm2, %v5896_v25 }
  0xc2   : > { %4362 = vmatmul.mubr.msk.f32.gmra.mrb[14].mxu1 %vm510_vm2, %v5892_v23  ;;  %v5979_v23 = vld [vmem:[%s5665_s7 + $0x130] sm:$0x3] }
  0xc3   : > { %4562 = vmatmul.mubr.msk.f32.gmra.mrb[14].mxu0 %vm510_vm2, %v5918_v37  ;;  %4364 = vmatprep.mubr.msk.f32.mxu1 %vm510_vm2, %v5896_v25  ;;  %v491_v25 = vrot.slane %v5961_v26, 1  ;;  %v493_v9 = vrot.slane %v5979_v23, 1 }
  0xc4   : > { %4564 = vmatprep.mubr.msk.f32.mxu0 %vm510_vm2, %v5922_v44 }
  0xc6   : > { %4365 = vmatmul.mubr.msk.f32.gmra.mrb[16].mxu1 %vm510_vm2, %v5918_v37  ;;  %v490_v37 = vrot.slane %v5958_v24, 1 }
  0xc7   : > { %4565 = vmatmul.mubr.msk.f32.gmra.mrb[16].mxu0 %vm510_vm2, %v5944_v59  ;;  %4367 = vmatprep.mubr.msk.f32.mxu1 %vm510_vm2, %v5922_v44  ;;  %v5984_v44 = vld [vmem:[%s5665_s7 + $0x138] sm:$0xff] }
  0xc8   : > { %4567 = vmatprep.mubr.msk.f32.mxu0 %vm510_vm2, %v5948_v0  ;;  %v495_v10 = vrot.slane %v5984_v44, 1 }
  0xca   : > { %4368 = vmatmul.mubr.msk.f32.gmra.mrb[18].mxu1 %vm510_vm2, %v5944_v59  ;;  %v6000_v59 = vsel %vm429_vm1, %v490_v37, %v491_v25  ;;  %v6022_v37 = vsel %vm429_vm1, %v491_v25, %v493_v9  ;;  %v6039_v25 = vld [vmem:[%s5665_s7 + $0x170] sm:$0xff]  ;;  %v503_v9 = vrot.slane %v6031_v49, 1 }
  0xcb   : > { %4568 = vmatmul.mubr.msk.f32.gmra.mrb[18].mxu0 %vm510_vm2, %v5970_v27  ;;  %4370 = vmatprep.mubr.msk.f32.mxu1 %vm510_vm2, %v5948_v0  ;;  %7105 = vst [vmem:[#allocation39_spill] sm:$0xff] %v6000_v59  ;;  %v6010_v0 = vld [vmem:[%s5665_s7 + $0x150] sm:$0xff]  ;;  %7106 = vst [vmem:[#allocation40_spill] sm:$0xff] %v6022_v37  ;;  %v506_v41 = vrot.slane %v6039_v25, 1 }
  0xcc   : > { %4570 = vmatprep.mubr.msk.f32.mxu0 %vm510_vm2, %v5974_v45  ;;  %v500_v58 = vrot.slane %v6010_v0, 1 }
  0xce   : > { %4371 = vmatmul.mubr.msk.f32.gmra.mrb[20].mxu1 %vm510_vm2, %v5970_v27  ;;  %v6026_v27 = vsel %vm429_vm1, %v495_v10, %v496_v8  ;;  %v6048_v10 = vsel %vm429_vm1, %v496_v8, %v498_v42  ;;  %v508_v8 = vrot.slane %v6057_v35, 1 }
  0xcf   : > { %4571 = vmatmul.mubr.msk.f32.gmra.mrb[20].mxu0 %vm510_vm2, %v5996_v63  ;;  %4373 = vmatprep.mubr.msk.f32.mxu1 %vm510_vm2, %v5974_v45  ;;  %7107 = vst [vmem:[#allocation41_spill] sm:$0xff] %v6026_v27  ;;  %v6036_v45 = vld [vmem:[%s5665_s7 + $0x168] sm:$0xff]  ;;  %7108 = vst [vmem:[#allocation42_spill] sm:$0xff] %v6048_v10 }
  0xd0   : > { %4573 = vmatprep.mubr.msk.f32.mxu0 %vm510_vm2, %v6000_v59  ;;  %v505_v43 = vrot.slane %v6036_v45, 1 }
  0xd2   : > { %4374 = vmatmul.mubr.msk.f32.gmra.mrb[22].mxu1 %vm510_vm2, %v5996_v63  ;;  %v6052_v63 = vsel %vm429_vm1, %v500_v58, %v501_v51  ;;  %v6074_v58 = vsel %vm429_vm1, %v501_v51, %v503_v9  ;;  %v6078_v42 = vsel %vm429_vm1, %v505_v43, %v506_v41  ;;  %v6094_v43 = vsel %vm429_vm1, %v506_v41, %v508_v8 }
  0xd3   : > { %4574 = vmatmul.mubr.msk.f32.gmra.mrb[22].mxu0 %vm510_vm2, %v6022_v37  ;;  %4376 = vmatprep.mubr.msk.f32.mxu1 %vm510_vm2, %v6000_v59  ;;  %7109 = vst [vmem:[#allocation43_spill] sm:$0xff] %v6052_v63  ;;  %v6062_v59 = vld [vmem:[%s5665_s7 + $0x180] sm:$0xff]  ;;  %7112 = vst [vmem:[#allocation46_spill] sm:$0xff] %v6074_v58  ;;  %v1771_v51 = vrot.slane %v6083_v12, 1  ;;  %v1105_v41 = vrot.slane %v5707_v13, 2 }
  0xd4   : > { %4576 = vmatprep.mubr.msk.f32.mxu0 %vm510_vm2, %v6026_v27  ;;  %7110 = vst [vmem:[#allocation44_spill] sm:$0xff] %v6062_v59  ;;  %7113 = vst [vmem:[#allocation47_spill] sm:$0xff] %v6078_v42 }
  0xd5   : > { %7114 = vst [vmem:[#allocation48_spill] sm:$0xff] %v6094_v43 }
  0xd6   : > { %4377 = vmatmul.mubr.msk.f32.gmra.mrb[24].mxu1 %vm510_vm2, %v6022_v37  ;;  %v1768_v37 = vrot.slane %v6062_v59, 1 }
  0xd7   : > { %4577 = vmatmul.mubr.msk.f32.gmra.mrb[24].mxu0 %vm510_vm2, %v6048_v10  ;;  %4379 = vmatprep.mubr.msk.f32.mxu1 %vm510_vm2, %v6026_v27  ;;  %v1102_v27 = vrot.slane %v5689_v5, 2 }
  0xd8   : > { %4579 = vmatprep.mubr.msk.f32.mxu0 %vm510_vm2, %v6052_v63  ;;  %v6098_v9 = vsel %vm429_vm1, %v1768_v37, %v1769_v30  ;;  %v6112_v37 = vsel %vm429_vm1, %v1769_v30, %v1771_v51  ;;  %v1110_v30 = vrot.slane %v5717_v19, 2  ;;  %v1112_v51 = vrot.slane %v5720_v20, 2 }
  0xd9   : > { %7115 = vst [vmem:[#allocation49_spill] sm:$0xff] %v6098_v9  ;;  %7116 = vst [vmem:[#allocation50_spill] sm:$0xff] %v6112_v37 }
  0xda   : > { %4380 = vmatmul.mubr.msk.f32.gmra.mrb[26].mxu1 %vm510_vm2, %v6048_v10  ;;  %v1103_v10 = vrot.slane %v5692_v6, 2 }
  0xdb   : > { %4580 = vmatmul.mubr.msk.f32.gmra.mrb[26].mxu0 %vm510_vm2, %v6074_v58  ;;  %4382 = vmatprep.mubr.msk.f32.mxu1 %vm510_vm2, %v6052_v63  ;;  %v1108_v63 = vrot.slane %v5710_v14, 2 }
  0xdc   : > { %4582 = vmatprep.mubr.msk.f32.mxu0 %vm510_vm2, %v6078_v42  ;;  %v6115_v8 = vsel %vm1096_vm3, %v1102_v27, %v1103_v10  ;;  %v6128_v13 = vsel %vm1096_vm3, %v1103_v10, %v1105_v41  ;;  %v6144_v10 = vld [vmem:[#allocation5 + $0xc] sm:$0xf] }
  0xdd   : > { %v6151_v19 = vsel %vm1096_vm3, %v1108_v63, %v1110_v30  ;;  %v1123_v30 = vrot.slane %v5769_v40, 2 }
  0xde   : > { %4383 = vmatmul.mubr.msk.f32.gmra.mrb[28].mxu1 %vm510_vm2, %v6074_v58  ;;  %v1107_v58 = vrot.slane %v5700_v11, 2 }
  0xdf   : > { %4583 = vmatmul.mubr.msk.f32.gmra.mrb[28].mxu0 %vm510_vm2, %v6094_v43  ;;  %4385 = vmatprep.mubr.msk.f32.mxu1 %vm510_vm2, %v6078_v42  ;;  %v1118_v42 = vrot.slane %v5745_v32, 2 }
  0xe0   : > { %4585 = vmatprep.mubr.msk.f32.mxu0 %vm510_vm2, %v6098_v9  ;;  %v6132_v27 = vsel %vm1096_vm3, %v1107_v58, %v1108_v63  ;;  %v1113_v9 = vrot.slane %v5723_v21, 2  ;;  %v1115_v58 = vrot.slane %v5734_v28, 2  ;;  %v1122_v63 = vrot.slane %v5766_v39, 2 }
  0xe2   : > { %4386 = vmatmul.mubr.msk.f32.gmra.mrb[30].mxu1 %vm510_vm2, %v6094_v43  ;;  %v6155_v41 = vsel %vm1096_vm3, %v1112_v51, %v1113_v9  ;;  %v1117_v43 = vrot.slane %v5742_v31, 2  ;;  %v6174_v28 = vsel %vm1096_vm3, %v1113_v9, %v1115_v58  ;;  %v6195_v9 = vsel %vm1096_vm3, %v1122_v63, %v1123_v30 }
  0xe3   : > { %4586 = vmatmul.mubr.msk.f32.gmra.mrb[30].mxu0 %vm510_vm2, %v6112_v37  ;;  %4390 = vmatprep.mubr.msk.f32.mxu1 %vm510_vm2, %v5680_v2  ;;  %v6138_v37 = vld [vmem:[#allocation5 + $0x1c] sm:$0xf]  ;;  %v1127_v51 = vrot.slane %v5792_v47, 2  ;;  %v1128_v58 = vrot.slane %v5795_v48, 2  ;;  %v1132_v63 = vrot.slane %v5818_v55, 2 }
  0xe4   : > { %4590 = vmatprep.mubr.msk.f32.mxu0 %vm510_vm2, %v6115_v8 }
  0xe6   : > { %4391 = vmatmul.mubr.msk.f32.vlgmr.msra.gmra.mrb[0].mxu1 %vm510_vm2, %v5685_v3 }
  0xe7   : > { %4591 = vmatmul.mubr.msk.f32.vlgmr.msra.gmra.mrb[0].mxu0 %vm510_vm2, %v6128_v13  ;;  %4393 = vmatprep.mubr.msk.f32.mxu1 %vm510_vm2, %v5689_v5  ;;  %v1138_v5 = vrot.slane %v5855_v7, 2 }
  0xe8   : > { %4639 = vmatpush3.msk.msra.mxu0 %vm575_vm0, %v5834_v60  ;;  %4593 = vmatprep.mubr.msk.f32.mxu0 %vm510_vm2, %v6132_v27  ;;  %v1120_v60 = vrot.slane %v5762_v38, 2 }
  0xe9   : > { %4439 = vmatpush3.msk.msra.mxu1 %vm575_vm0, %v5836_v61  ;;  %4688 = vmatprep.subr.msk.mxu0 %vm575_vm0, %v6138_v37  ;;  %v6178_v61 = vsel %vm1096_vm3, %v1117_v43, %v1118_v42  ;;  %v1125_v43 = vrot.slane %v5787_v46, 2 }
  0xea   : > { %4394 = vmatmul.mubr.msk.f32.gmra.mrb[2].mxu1 %vm510_vm2, %v5692_v6  ;;  %4488 = vmatprep.subr.msk.mxu1 %vm575_vm0, %v6144_v10  ;;  %v6191_v38 = vsel %vm1096_vm3, %v1118_v42, %v1120_v60  ;;  %v1130_v42 = vrot.slane %v5813_v54, 2  ;;  %v6212_v60 = vsel %vm1096_vm3, %v1127_v51, %v1128_v58  ;;  %v1133_v6 = vrot.slane %v5821_v56, 2 }
  0xeb   : > { %4594 = vmatmul.mubr.msk.f32.gmra.mrb[2].mxu0 %vm510_vm2, %v6151_v19  ;;  %4396 = vmatprep.mubr.msk.f32.mxu1 %vm510_vm2, %v5700_v11  ;;  %v6208_v46 = vsel %vm1096_vm3, %v1123_v30, %v1125_v43  ;;  %7117 = vst [vmem:[#allocation51_spill] sm:$0xff] %v6212_v60  ;;  %v1135_v30 = vrot.slane %v5844_v1, 2  ;;  %v1137_v51 = vrot.slane %v5852_v4, 2 }
  0xec   : > { %4596 = vmatprep.mubr.msk.f32.mxu0 %vm510_vm2, %v6155_v41  ;;  %v6225_v54 = vsel %vm1096_vm3, %v1128_v58, %v1130_v42  ;;  %v6229_v43 = vsel %vm1096_vm3, %v1132_v63, %v1133_v6  ;;  %v1140_v58 = vrot.slane %v5875_v17, 2  ;;  %v1142_v63 = vrot.slane %v5880_v18, 2 }
  0xed   : > { %7118 = vst [vmem:[#allocation52_spill] sm:$0xff] %v6229_v43  ;;  %v6242_v1 = vsel %vm1096_vm3, %v1133_v6, %v1135_v30  ;;  %v6246_v42 = vsel %vm1096_vm3, %v1137_v51, %v1138_v5  ;;  %v1145_v17 = vrot.slane %v5901_v29, 2  ;;  %v1147_v51 = vrot.slane %v5906_v34, 2 }
  0xee   : > { %4397 = vmatmul.mubr.msk.f32.gmra.mrb[4].mxu1 %vm510_vm2, %v5710_v14  ;;  %7119 = vst [vmem:[#allocation53_spill] sm:$0xff] %v6246_v42  ;;  %v6259_v6 = vsel %vm1096_vm3, %v1138_v5, %v1140_v58  ;;  %v1150_v29 = vrot.slane %v5927_v52, 2 }
  0xef   : > { %4597 = vmatmul.mubr.msk.f32.gmra.mrb[4].mxu0 %vm510_vm2, %v6174_v28  ;;  %4399 = vmatprep.mubr.msk.f32.mxu1 %vm510_vm2, %v5720_v20 }
  0xf0   : > { %4599 = vmatprep.mubr.msk.f32.mxu0 %vm510_vm2, %v6178_v61 }
  0xf2   : > { %4400 = vmatmul.mubr.msk.f32.gmra.mrb[6].mxu1 %vm510_vm2, %v5723_v21 }
  0xf3   : > { %4600 = vmatmul.mubr.msk.f32.gmra.mrb[6].mxu0 %vm510_vm2, %v6191_v38  ;;  %4402 = vmatprep.mubr.msk.f32.mxu1 %vm510_vm2, %v5742_v31 }
  0xf4   : > { %4602 = vmatprep.mubr.msk.f32.mxu0 %vm510_vm2, %v6195_v9 }
  0xf6   : > { %4403 = vmatmul.mubr.msk.f32.gmra.mrb[8].mxu1 %vm510_vm2, %v5745_v32 }
  0xf7   : > { %4603 = vmatmul.mubr.msk.f32.gmra.mrb[8].mxu0 %vm510_vm2, %v6208_v46  ;;  %4405 = vmatprep.mubr.msk.f32.mxu1 %vm510_vm2, %v5766_v39 }
  0xf8   : > { %4605 = vmatprep.mubr.msk.f32.mxu0 %vm510_vm2, %v6212_v60  ;;  %v1143_v60 = vrot.slane %v5883_v22, 2 }
  0xfa   : > { %4406 = vmatmul.mubr.msk.f32.gmra.mrb[10].mxu1 %vm510_vm2, %v5769_v40  ;;  %v6263_v30 = vsel %vm1096_vm3, %v1142_v63, %v1143_v60  ;;  %v6276_v5 = vsel %vm1096_vm3, %v1143_v60, %v1145_v17  ;;  %v1152_v63 = vrot.slane %v5932_v53, 2  ;;  %v1155_v60 = vrot.slane %v5953_v16, 2 }
  0xfb   : > { %4606 = vmatmul.mubr.msk.f32.gmra.mrb[10].mxu0 %vm510_vm2, %v6225_v54  ;;  %4408 = vmatprep.mubr.msk.f32.mxu1 %vm510_vm2, %v5792_v47  ;;  %7120 = vst [vmem:[#allocation54_spill] sm:$0xff] %v6263_v30 }
  0xfc   : > { %4608 = vmatprep.mubr.msk.f32.mxu0 %vm510_vm2, %v6229_v43  ;;  %v1148_v43 = vrot.slane %v5909_v36, 2 }
  0xfe   : > { %4409 = vmatmul.mubr.msk.f32.gmra.mrb[12].mxu1 %vm510_vm2, %v5795_v48  ;;  %v6280_v58 = vsel %vm1096_vm3, %v1147_v51, %v1148_v43  ;;  %v6293_v52 = vsel %vm1096_vm3, %v1148_v43, %v1150_v29  ;;  %v1157_v51 = vrot.slane %v5958_v24, 2  ;;  %v1160_v43 = vrot.slane %v5979_v23, 2 }
  0xff   : > { %4609 = vmatmul.mubr.msk.f32.gmra.mrb[12].mxu0 %vm510_vm2, %v6242_v1  ;;  %4411 = vmatprep.mubr.msk.f32.mxu1 %vm510_vm2, %v5818_v55  ;;  %7121 = vst [vmem:[#allocation55_spill] sm:$0xff] %v6280_v58 }
 0x100   : > { %4611 = vmatprep.mubr.msk.f32.mxu0 %vm510_vm2, %v6246_v42  ;;  %v1153_v42 = vrot.slane %v5935_v57, 2 }
 0x102   : > { %4412 = vmatmul.mubr.msk.f32.gmra.mrb[14].mxu1 %vm510_vm2, %v5821_v56  ;;  %v6297_v17 = vsel %vm1096_vm3, %v1152_v63, %v1153_v42  ;;  %v6310_v16 = vsel %vm1096_vm3, %v1153_v42, %v1155_v60  ;;  %v1162_v63 = vrot.slane %v5984_v44, 2  ;;  %v1165_v42 = vrot.slane %v6005_v62, 2 }
 0x103   : > { %4612 = vmatmul.mubr.msk.f32.gmra.mrb[14].mxu0 %vm510_vm2, %v6259_v6  ;;  %4414 = vmatprep.mubr.msk.f32.mxu1 %vm510_vm2, %v5852_v4  ;;  %7122 = vst [vmem:[#allocation56_spill] sm:$0xff] %v6297_v17 }
 0x104   : > { %4614 = vmatprep.mubr.msk.f32.mxu0 %vm510_vm2, %v6263_v30  ;;  %v1158_v30 = vrot.slane %v5961_v26, 2 }
 0x106   : > { %4415 = vmatmul.mubr.msk.f32.gmra.mrb[16].mxu1 %vm510_vm2, %v5855_v7  ;;  %v6314_v29 = vsel %vm1096_vm3, %v1157_v51, %v1158_v30  ;;  %v6327_v23 = vsel %vm1096_vm3, %v1158_v30, %v1160_v43  ;;  %v1167_v51 = vrot.slane %v6010_v0, 2  ;;  %v1170_v30 = vrot.slane %v6031_v49, 2 }
 0x107   : > { %4615 = vmatmul.mubr.msk.f32.gmra.mrb[16].mxu0 %vm510_vm2, %v6276_v5  ;;  %4417 = vmatprep.mubr.msk.f32.mxu1 %vm510_vm2, %v5880_v18  ;;  %7123 = vst [vmem:[#allocation57_spill] sm:$0xff] %v6314_v29 }
 0x108   : > { %4617 = vmatprep.mubr.msk.f32.mxu0 %vm510_vm2, %v6280_v58  ;;  %v1163_v58 = vrot.slane %v5987_v50, 2 }
 0x10a   : > { %4418 = vmatmul.mubr.msk.f32.gmra.mrb[18].mxu1 %vm510_vm2, %v5883_v22  ;;  %v6331_v60 = vsel %vm1096_vm3, %v1162_v63, %v1163_v58  ;;  %v6344_v62 = vsel %vm1096_vm3, %v1163_v58, %v1165_v42  ;;  %v1172_v63 = vrot.slane %v6036_v45, 2  ;;  %v1175_v58 = vrot.slane %v6057_v35, 2 }
 0x10b   : > { %4618 = vmatmul.mubr.msk.f32.gmra.mrb[18].mxu0 %vm510_vm2, %v6293_v52  ;;  %4420 = vmatprep.mubr.msk.f32.mxu1 %vm510_vm2, %v5906_v34  ;;  %7124 = vst [vmem:[#allocation58_spill] sm:$0xff] %v6331_v60 }
 0x10c   : > { %4620 = vmatprep.mubr.msk.f32.mxu0 %vm510_vm2, %v6297_v17  ;;  %v1168_v17 = vrot.slane %v6013_v15, 2 }
 0x10e   : > { %4421 = vmatmul.mubr.msk.f32.gmra.mrb[20].mxu1 %vm510_vm2, %v5909_v36  ;;  %v6348_v43 = vsel %vm1096_vm3, %v1167_v51, %v1168_v17  ;;  %v6361_v49 = vsel %vm1096_vm3, %v1168_v17, %v1170_v30  ;;  %v2037_v51 = vrot.slane %v6062_v59, 2  ;;  %v2040_v17 = vrot.slane %v6083_v12, 2 }
 0x10f   : > { %4621 = vmatmul.mubr.msk.f32.gmra.mrb[20].mxu0 %vm510_vm2, %v6310_v16  ;;  %4423 = vmatprep.mubr.msk.f32.mxu1 %vm510_vm2, %v5932_v53  ;;  %7125 = vst [vmem:[#allocation59_spill] sm:$0xff] %v6361_v49  ;;  %v1097_v30 = vrot.slane %v5680_v2, 2 }
 0x110   : > { %4623 = vmatprep.mubr.msk.f32.mxu0 %vm510_vm2, %v6314_v29  ;;  %v1173_v29 = vrot.slane %v6039_v25, 2 }
 0x112   : > { %4424 = vmatmul.mubr.msk.f32.gmra.mrb[22].mxu1 %vm510_vm2, %v5935_v57  ;;  %v6365_v42 = vsel %vm1096_vm3, %v1172_v63, %v1173_v29  ;;  %v6378_v35 = vsel %vm1096_vm3, %v1173_v29, %v1175_v58  ;;  %v1098_v63 = vrot.slane %v5685_v3, 2  ;;  %v6408_v29 = vld [vmem:[#allocation5 + $0x20] sm:$0xf] }
 0x113   : > { %4624 = vmatmul.mubr.msk.f32.gmra.mrb[22].mxu0 %vm510_vm2, %v6327_v23  ;;  %4426 = vmatprep.mubr.msk.f32.mxu1 %vm510_vm2, %v5958_v24  ;;  %7126 = vst [vmem:[#allocation60_spill] sm:$0xff] %v6365_v42  ;;  %7127 = vst [vmem:[#allocation61_spill] sm:$0xff] %v6378_v35  ;;  %v7138_v58 = vld [vmem:[#allocation58_spill] sm:$0xff] }
 0x114   : > { %4626 = vmatprep.mubr.msk.f32.mxu0 %vm510_vm2, %v6331_v60  ;;  %v2038_v60 = vrot.slane %v6065_v33, 2  ;;  %v1099_v3 = vsel %vm1096_vm3, %v1097_v30, %v1098_v63 }
 0x116   : > { %4427 = vmatmul.mubr.msk.f32.gmra.mrb[24].mxu1 %vm510_vm2, %v5961_v26  ;;  %v6384_v33 = vsel %vm1096_vm3, %v2037_v51, %v2038_v60  ;;  %v6396_v2 = vsel %vm1096_vm3, %v2038_v60, %v2040_v17  ;;  %v7136_v60 = vld [vmem:[#allocation56_spill] sm:$0xff]  ;;  %v7140_v30 = vld [vmem:[#allocation59_spill] sm:$0xff] }
 0x117   : > { %4627 = vmatmul.mubr.msk.f32.gmra.mrb[24].mxu0 %vm510_vm2, %v6344_v62  ;;  %4429 = vmatprep.mubr.msk.f32.mxu1 %vm510_vm2, %v5984_v44  ;;  %7128 = vst [vmem:[#allocation62_spill] sm:$0xff] %v6384_v33  ;;  %v7139_v51 = vld [vmem:[#allocation44_spill] sm:$0xff] }
 0x118   : > { %4629 = vmatprep.mubr.msk.f32.mxu0 %vm510_vm2, %v6348_v43  ;;  %v6527_v17 = vld [vmem:[%s5665_s7 + $0x198] sm:$0xff] }
 0x11a   : > { %4430 = vmatmul.mubr.msk.f32.gmra.mrb[26].mxu1 %vm510_vm2, %v5987_v50 }
 0x11b   : > { %4630 = vmatmul.mubr.msk.f32.gmra.mrb[26].mxu0 %vm510_vm2, %v6361_v49  ;;  %4432 = vmatprep.mubr.msk.f32.mxu1 %vm510_vm2, %v6010_v0  ;;  %v7129_v49 = vld [vmem:[#allocation18_spill] sm:$0xff] }
 0x11c   : > { %4632 = vmatprep.mubr.msk.f32.mxu0 %vm510_vm2, %v6365_v42  ;;  %v1100_v59 = vrot.slane %v7129_v49, 2  ;;  %7130 = vst [vmem:[#allocation18_spill] sm:$0xff] %v6396_v2  ;;  %v7137_v49 = vld [vmem:[#allocation57_spill] sm:$0xff] }
 0x11e   : > { %4433 = vmatmul.mubr.msk.f32.gmra.mrb[28].mxu1 %vm510_vm2, %v6013_v15  ;;  %v1101_v12 = vsel %vm1096_vm3, %v1098_v63, %v1100_v59  ;;  %v7131_v59 = vld [vmem:[#allocation51_spill] sm:$0xff]  ;;  %v7141_v63 = vld [vmem:[#allocation45_spill] sm:$0xff] }
 0x11f   : > { %4633 = vmatmul.mubr.msk.f32.gmra.mrb[28].mxu0 %vm510_vm2, %v6378_v35  ;;  %4435 = vmatprep.mubr.msk.f32.mxu1 %vm510_vm2, %v6036_v45 }
 0x120   : > { %4635 = vmatprep.mubr.msk.f32.mxu0 %vm510_vm2, %v6384_v33  ;;  %v7144_v33 = vld [vmem:[#allocation17_spill] sm:$0xff] }
 0x122   : > { %4436 = vmatmul.mubr.msk.f32.gmra.mrb[30].mxu1 %vm510_vm2, %v6039_v25 }
 0x123   : > { %4636 = vmatmul.mubr.msk.f32.gmra.mrb[30].mxu0 %vm510_vm2, %v6396_v2  ;;  %4440 = vmatprep.mubr.msk.f32.mxu1 %vm510_vm2, %v1099_v3  ;;  %v6538_v3 = vld [vmem:[%s5665_s7 + $0x1a0] sm:$0xff] }
 0x124   : > { %4640 = vmatprep.mubr.msk.f32.mxu0 %vm510_vm2, %v5700_v11  ;;  %v7143_v2 = vld [vmem:[#allocation19_spill] sm:$0xff] }
 0x126   : > { %4441 = vmatmul.mubr.msk.f32.vlgmr.msra.gmra.mrb[0].mxu1 %vm510_vm2, %v1101_v12  ;;  %v7142_v12 = vld [vmem:[#allocation16_spill] sm:$0xff] }
 0x127   : > { %4641 = vmatmul.mubr.msk.f32.vlgmr.msra.gmra.mrb[0].mxu0 %vm510_vm2, %v5710_v14  ;;  %4443 = vmatprep.mubr.msk.f32.mxu1 %vm510_vm2, %v6115_v8  ;;  %v7133_v8 = vld [vmem:[#allocation53_spill] sm:$0xff] }
 0x128   : > { %4689 = vmatpush3.msk.msra.mxu0 %vm575_vm0, %v6138_v37  ;;  %4643 = vmatprep.mubr.msk.f32.mxu0 %vm510_vm2, %v5720_v20  ;;  %v7132_v37 = vld [vmem:[#allocation52_spill] sm:$0xff] }
 0x129   : > { %4489 = vmatpush3.msk.msra.mxu1 %vm575_vm0, %v6144_v10  ;;  %4738 = vmatprep.subr.msk.mxu0 %vm575_vm0, %v6408_v29  ;;  %v7135_v10 = vld [vmem:[#allocation55_spill] sm:$0xff] }
 0x12a   : > { %4444 = vmatmul.mubr.msk.f32.gmra.mrb[2].mxu1 %vm510_vm2, %v6128_v13  ;;  %v7134_v13 = vld [vmem:[#allocation54_spill] sm:$0xff] }
 0x12b   : > { %4644 = vmatmul.mubr.msk.f32.gmra.mrb[2].mxu0 %vm510_vm2, %v5723_v21  ;;  %4446 = vmatprep.mubr.msk.f32.mxu1 %vm510_vm2, %v6132_v27 }
 0x12c   : > { %4646 = vmatprep.mubr.msk.f32.mxu0 %vm510_vm2, %v5742_v31 }
 0x12e   : > { %4447 = vmatmul.mubr.msk.f32.gmra.mrb[4].mxu1 %vm510_vm2, %v6151_v19 }
 0x12f   : > { %4647 = vmatmul.mubr.msk.f32.gmra.mrb[4].mxu0 %vm510_vm2, %v5745_v32  ;;  %4449 = vmatprep.mubr.msk.f32.mxu1 %vm510_vm2, %v6155_v41 }
 0x130   : > { %4649 = vmatprep.mubr.msk.f32.mxu0 %vm510_vm2, %v5766_v39 }
 0x132   : > { %4450 = vmatmul.mubr.msk.f32.gmra.mrb[6].mxu1 %vm510_vm2, %v6174_v28 }
 0x133   : > { %4650 = vmatmul.mubr.msk.f32.gmra.mrb[6].mxu0 %vm510_vm2, %v5769_v40  ;;  %4452 = vmatprep.mubr.msk.f32.mxu1 %vm510_vm2, %v6178_v61 }
 0x134   : > { %4652 = vmatprep.mubr.msk.f32.mxu0 %vm510_vm2, %v5792_v47 }
 0x136   : > { %4453 = vmatmul.mubr.msk.f32.gmra.mrb[8].mxu1 %vm510_vm2, %v6191_v38 }
 0x137   : > { %4653 = vmatmul.mubr.msk.f32.gmra.mrb[8].mxu0 %vm510_vm2, %v5795_v48  ;;  %4455 = vmatprep.mubr.msk.f32.mxu1 %vm510_vm2, %v6195_v9 }
 0x138   : > { %4655 = vmatprep.mubr.msk.f32.mxu0 %vm510_vm2, %v5818_v55 }
 0x13a   : > { %4456 = vmatmul.mubr.msk.f32.gmra.mrb[10].mxu1 %vm510_vm2, %v6208_v46 }
 0x13b   : > { %4656 = vmatmul.mubr.msk.f32.gmra.mrb[10].mxu0 %vm510_vm2, %v5821_v56  ;;  %4458 = vmatprep.mubr.msk.f32.mxu1 %vm510_vm2, %v7131_v59 }
 0x13c   : > { %4658 = vmatprep.mubr.msk.f32.mxu0 %vm510_vm2, %v5852_v4 }
 0x13e   : > { %4459 = vmatmul.mubr.msk.f32.gmra.mrb[12].mxu1 %vm510_vm2, %v6225_v54 }
 0x13f   : > { %4659 = vmatmul.mubr.msk.f32.gmra.mrb[12].mxu0 %vm510_vm2, %v5855_v7  ;;  %4461 = vmatprep.mubr.msk.f32.mxu1 %vm510_vm2, %v7132_v37 }
 0x140   : > { %4661 = vmatprep.mubr.msk.f32.mxu0 %vm510_vm2, %v5880_v18 }
 0x142   : > { %4462 = vmatmul.mubr.msk.f32.gmra.mrb[14].mxu1 %vm510_vm2, %v6242_v1 }
 0x143   : > { %4662 = vmatmul.mubr.msk.f32.gmra.mrb[14].mxu0 %vm510_vm2, %v5883_v22  ;;  %4464 = vmatprep.mubr.msk.f32.mxu1 %vm510_vm2, %v7133_v8 }
 0x144   : > { %4664 = vmatprep.mubr.msk.f32.mxu0 %vm510_vm2, %v5906_v34 }
 0x146   : > { %4465 = vmatmul.mubr.msk.f32.gmra.mrb[16].mxu1 %vm510_vm2, %v6259_v6 }
 0x147   : > { %4665 = vmatmul.mubr.msk.f32.gmra.mrb[16].mxu0 %vm510_vm2, %v5909_v36  ;;  %4467 = vmatprep.mubr.msk.f32.mxu1 %vm510_vm2, %v7134_v13 }
 0x148   : > { %4667 = vmatprep.mubr.msk.f32.mxu0 %vm510_vm2, %v5932_v53 }
 0x14a   : > { %4468 = vmatmul.mubr.msk.f32.gmra.mrb[18].mxu1 %vm510_vm2, %v6276_v5 }
 0x14b   : > { %4668 = vmatmul.mubr.msk.f32.gmra.mrb[18].mxu0 %vm510_vm2, %v5935_v57  ;;  %4470 = vmatprep.mubr.msk.f32.mxu1 %vm510_vm2, %v7135_v10 }
 0x14c   : > { %4670 = vmatprep.mubr.msk.f32.mxu0 %vm510_vm2, %v5958_v24 }
 0x14e   : > { %4471 = vmatmul.mubr.msk.f32.gmra.mrb[20].mxu1 %vm510_vm2, %v6293_v52 }
 0x14f   : > { %4671 = vmatmul.mubr.msk.f32.gmra.mrb[20].mxu0 %vm510_vm2, %v5961_v26  ;;  %4473 = vmatprep.mubr.msk.f32.mxu1 %vm510_vm2, %v7136_v60 }
 0x150   : > { %4673 = vmatprep.mubr.msk.f32.mxu0 %vm510_vm2, %v5984_v44 }
 0x152   : > { %4474 = vmatmul.mubr.msk.f32.gmra.mrb[22].mxu1 %vm510_vm2, %v6310_v16 }
 0x153   : > { %4674 = vmatmul.mubr.msk.f32.gmra.mrb[22].mxu0 %vm510_vm2, %v5987_v50  ;;  %4476 = vmatprep.mubr.msk.f32.mxu1 %vm510_vm2, %v7137_v49 }
 0x154   : > { %4676 = vmatprep.mubr.msk.f32.mxu0 %vm510_vm2, %v6010_v0 }
 0x156   : > { %4477 = vmatmul.mubr.msk.f32.gmra.mrb[24].mxu1 %vm510_vm2, %v6327_v23 }
 0x157   : > { %4677 = vmatmul.mubr.msk.f32.gmra.mrb[24].mxu0 %vm510_vm2, %v6013_v15  ;;  %4479 = vmatprep.mubr.msk.f32.mxu1 %vm510_vm2, %v7138_v58 }
 0x158   : > { %4679 = vmatprep.mubr.msk.f32.mxu0 %vm510_vm2, %v6036_v45 }
 0x15a   : > { %4480 = vmatmul.mubr.msk.f32.gmra.mrb[26].mxu1 %vm510_vm2, %v6344_v62 }
 0x15b   : > { %4680 = vmatmul.mubr.msk.f32.gmra.mrb[26].mxu0 %vm510_vm2, %v6039_v25  ;;  %4482 = vmatprep.mubr.msk.f32.mxu1 %vm510_vm2, %v6348_v43 }
 0x15c   : > { %4682 = vmatprep.mubr.msk.f32.mxu0 %vm510_vm2, %v7139_v51 }
 0x15e   : > { %4483 = vmatmul.mubr.msk.f32.gmra.mrb[28].mxu1 %vm510_vm2, %v7140_v30 }
 0x15f   : > { %4683 = vmatmul.mubr.msk.f32.gmra.mrb[28].mxu0 %vm510_vm2, %v7141_v63  ;;  %4485 = vmatprep.mubr.msk.f32.mxu1 %vm510_vm2, %v6365_v42  ;;  %v7145_v42 = vld [vmem:[#allocation20_spill] sm:$0xff] }
 0x160   : > { %4685 = vmatprep.mubr.msk.f32.mxu0 %vm510_vm2, %v6527_v17 }
 0x162   : > { %4486 = vmatmul.mubr.msk.f32.gmra.mrb[30].mxu1 %vm510_vm2, %v6378_v35  ;;  %v7146_v35 = vld [vmem:[#allocation21_spill] sm:$0xff] }
 0x163   : > { %4686 = vmatmul.mubr.msk.f32.gmra.mrb[30].mxu0 %vm510_vm2, %v6538_v3  ;;  %4490 = vmatprep.mubr.msk.f32.mxu1 %vm510_vm2, %v7142_v12  ;;  %v7147_v12 = vld [vmem:[#allocation22_spill] sm:$0xff] }
 0x164   : > { %4690 = vmatprep.mubr.msk.f32.mxu0 %vm510_vm2, %v7143_v2  ;;  %v7171_v2 = vld [vmem:[#allocation48_spill] sm:$0xff] }
 0x166   : > { %4491 = vmatmul.mubr.msk.f32.vlgmr.msra.gmra.mrb[0].mxu1 %vm510_vm2, %v7144_v33  ;;  %v7148_v33 = vld [vmem:[#allocation23_spill] sm:$0xff] }
 0x167   : > { %4691 = vmatmul.mubr.msk.f32.vlgmr.msra.gmra.mrb[0].mxu0 %vm510_vm2, %v7145_v42  ;;  %4493 = vmatprep.mubr.msk.f32.mxu1 %vm510_vm2, %v5700_v11  ;;  %v7149_v11 = vld [vmem:[#allocation24_spill] sm:$0xff]  ;;  %v7150_v42 = vld [vmem:[#allocation25_spill] sm:$0xff] }
 0x168   : > { %4739 = vmatpush3.msk.msra.mxu0 %vm575_vm0, %v6408_v29  ;;  %4693 = vmatprep.mubr.msk.f32.mxu0 %vm510_vm2, %v7146_v35  ;;  %v2574_v35 = vrot.slane %v6538_v3, 1 }
 0x16a   : > { %4494 = vmatmul.mubr.msk.f32.gmra.mrb[2].mxu1 %vm510_vm2, %v5710_v14  ;;  %v7151_v14 = vld [vmem:[#allocation26_spill] sm:$0xff] }
 0x16b   : > { %4694 = vmatmul.mubr.msk.f32.gmra.mrb[2].mxu0 %vm510_vm2, %v7147_v12  ;;  %4496 = vmatprep.mubr.msk.f32.mxu1 %vm510_vm2, %v5720_v20  ;;  %v7152_v20 = vld [vmem:[#allocation27_spill] sm:$0xff]  ;;  %v7173_v12 = vld [vmem:[#allocation50_spill] sm:$0xff] }
 0x16c   : > { %4696 = vmatprep.mubr.msk.f32.mxu0 %vm510_vm2, %v7148_v33 }
 0x16e   : > { %4497 = vmatmul.mubr.msk.f32.gmra.mrb[4].mxu1 %vm510_vm2, %v5723_v21  ;;  %v7153_v21 = vld [vmem:[#allocation28_spill] sm:$0xff] }
 0x16f   : > { %4697 = vmatmul.mubr.msk.f32.gmra.mrb[4].mxu0 %vm510_vm2, %v7149_v11  ;;  %4499 = vmatprep.mubr.msk.f32.mxu1 %vm510_vm2, %v5742_v31  ;;  %v7154_v31 = vld [vmem:[#allocation29_spill] sm:$0xff] }
 0x170   : > { %4699 = vmatprep.mubr.msk.f32.mxu0 %vm510_vm2, %v7150_v42 }
 0x172   : > { %4500 = vmatmul.mubr.msk.f32.gmra.mrb[6].mxu1 %vm510_vm2, %v5745_v32  ;;  %v7155_v32 = vld [vmem:[#allocation30_spill] sm:$0xff] }
 0x173   : > { %4700 = vmatmul.mubr.msk.f32.gmra.mrb[6].mxu0 %vm510_vm2, %v7151_v14  ;;  %4502 = vmatprep.mubr.msk.f32.mxu1 %vm510_vm2, %v5766_v39  ;;  %v7156_v39 = vld [vmem:[#allocation31_spill] sm:$0xff] }
 0x174   : > { %4702 = vmatprep.mubr.msk.f32.mxu0 %vm510_vm2, %v7152_v20 }
 0x176   : > { %4503 = vmatmul.mubr.msk.f32.gmra.mrb[8].mxu1 %vm510_vm2, %v5769_v40  ;;  %v7157_v40 = vld [vmem:[#allocation32_spill] sm:$0xff] }
 0x177   : > { %4703 = vmatmul.mubr.msk.f32.gmra.mrb[8].mxu0 %vm510_vm2, %v7153_v21  ;;  %4505 = vmatprep.mubr.msk.f32.mxu1 %vm510_vm2, %v5792_v47  ;;  %v7158_v47 = vld [vmem:[#allocation33_spill] sm:$0xff] }
 0x178   : > { %4705 = vmatprep.mubr.msk.f32.mxu0 %vm510_vm2, %v7154_v31 }
 0x17a   : > { %4506 = vmatmul.mubr.msk.f32.gmra.mrb[10].mxu1 %vm510_vm2, %v5795_v48  ;;  %v7159_v48 = vld [vmem:[#allocation34_spill] sm:$0xff] }
 0x17b   : > { %4706 = vmatmul.mubr.msk.f32.gmra.mrb[10].mxu0 %vm510_vm2, %v7155_v32  ;;  %4508 = vmatprep.mubr.msk.f32.mxu1 %vm510_vm2, %v5818_v55  ;;  %v7160_v55 = vld [vmem:[#allocation35_spill] sm:$0xff] }
 0x17c   : > { %4708 = vmatprep.mubr.msk.f32.mxu0 %vm510_vm2, %v7156_v39 }
 0x17e   : > { %4509 = vmatmul.mubr.msk.f32.gmra.mrb[12].mxu1 %vm510_vm2, %v5821_v56  ;;  %v7161_v56 = vld [vmem:[#allocation36_spill] sm:$0xff] }
 0x17f   : > { %4709 = vmatmul.mubr.msk.f32.gmra.mrb[12].mxu0 %vm510_vm2, %v7157_v40  ;;  %4511 = vmatprep.mubr.msk.f32.mxu1 %vm510_vm2, %v5852_v4  ;;  %v7162_v4 = vld [vmem:[#allocation37_spill] sm:$0xff] }
 0x180   : > { %4711 = vmatprep.mubr.msk.f32.mxu0 %vm510_vm2, %v7158_v47  ;;  %v6791_v47 = vld [vmem:[#allocation7] ss:$0 sm:$0xff] }
 0x182   : > { %4512 = vmatmul.mubr.msk.f32.gmra.mrb[14].mxu1 %vm510_vm2, %v5855_v7  ;;  %v7163_v7 = vld [vmem:[#allocation38_spill] sm:$0xff] }
 0x183   : > { %4712 = vmatmul.mubr.msk.f32.gmra.mrb[14].mxu0 %vm510_vm2, %v7159_v48  ;;  %4514 = vmatprep.mubr.msk.f32.mxu1 %vm510_vm2, %v5880_v18  ;;  %v7164_v18 = vld [vmem:[#allocation39_spill] sm:$0xff] }
 0x184   : > { %4714 = vmatprep.mubr.msk.f32.mxu0 %vm510_vm2, %v7160_v55 }
 0x186   : > { %4515 = vmatmul.mubr.msk.f32.gmra.mrb[16].mxu1 %vm510_vm2, %v5883_v22  ;;  %v7165_v22 = vld [vmem:[#allocation40_spill] sm:$0xff] }
 0x187   : > { %4715 = vmatmul.mubr.msk.f32.gmra.mrb[16].mxu0 %vm510_vm2, %v7161_v56  ;;  %4517 = vmatprep.mubr.msk.f32.mxu1 %vm510_vm2, %v5906_v34  ;;  %v7166_v34 = vld [vmem:[#allocation41_spill] sm:$0xff] }
 0x188   : > { %4717 = vmatprep.mubr.msk.f32.mxu0 %vm510_vm2, %v7162_v4 }
 0x18a   : > { %4518 = vmatmul.mubr.msk.f32.gmra.mrb[18].mxu1 %vm510_vm2, %v5909_v36  ;;  %v7167_v36 = vld [vmem:[#allocation42_spill] sm:$0xff] }
 0x18b   : > { %4718 = vmatmul.mubr.msk.f32.gmra.mrb[18].mxu0 %vm510_vm2, %v7163_v7  ;;  %4520 = vmatprep.mubr.msk.f32.mxu1 %vm510_vm2, %v5932_v53  ;;  %v7168_v53 = vld [vmem:[#allocation43_spill] sm:$0xff] }
 0x18c   : > { %4720 = vmatprep.mubr.msk.f32.mxu0 %vm510_vm2, %v7164_v18 }
 0x18e   : > { %4521 = vmatmul.mubr.msk.f32.gmra.mrb[20].mxu1 %vm510_vm2, %v5935_v57  ;;  %v7169_v57 = vld [vmem:[#allocation46_spill] sm:$0xff] }
 0x18f   : > { %4721 = vmatmul.mubr.msk.f32.gmra.mrb[20].mxu0 %vm510_vm2, %v7165_v22  ;;  %4523 = vmatprep.mubr.msk.f32.mxu1 %vm510_vm2, %v5958_v24  ;;  %v7170_v24 = vld [vmem:[#allocation47_spill] sm:$0xff] }
 0x190   : > { %4723 = vmatprep.mubr.msk.f32.mxu0 %vm510_vm2, %v7166_v34 }
 0x192   : > { %4524 = vmatmul.mubr.msk.f32.gmra.mrb[22].mxu1 %vm510_vm2, %v5961_v26  ;;  %v2573_v26 = vrot.slane %v6527_v17, 1 }
 0x193   : > { %4724 = vmatmul.mubr.msk.f32.gmra.mrb[22].mxu0 %vm510_vm2, %v7167_v36  ;;  %4526 = vmatprep.mubr.msk.f32.mxu1 %vm510_vm2, %v5984_v44  ;;  %v380_v44 = vld [vmem:[%s5665_s7 + $0x1a8] sm:$0x3] }
 0x194   : > { %4726 = vmatprep.mubr.msk.f32.mxu0 %vm510_vm2, %v7168_v53  ;;  %v2575_v29 = vsel %vm429_vm1, %v2573_v26, %v2574_v35 }
 0x196   : > { %4527 = vmatmul.mubr.msk.f32.gmra.mrb[24].mxu1 %vm510_vm2, %v5987_v50  ;;  %v7172_v50 = vld [vmem:[#allocation49_spill] sm:$0xff] }
 0x197   : > { %4727 = vmatmul.mubr.msk.f32.gmra.mrb[24].mxu0 %vm510_vm2, %v7169_v57  ;;  %4529 = vmatprep.mubr.msk.f32.mxu1 %vm510_vm2, %v6010_v0  ;;  %v2576_v0 = vrot.slane %v380_v44, 1 }
 0x198   : > { %4729 = vmatprep.mubr.msk.f32.mxu0 %vm510_vm2, %v7170_v24 }
 0x19a   : > { %4530 = vmatmul.mubr.msk.f32.gmra.mrb[26].mxu1 %vm510_vm2, %v6013_v15  ;;  %v2577_v15 = vsel %vm429_vm1, %v2574_v35, %v2576_v0 }
 0x19b   : > { %4730 = vmatmul.mubr.msk.f32.gmra.mrb[26].mxu0 %vm510_vm2, %v7171_v2  ;;  %4532 = vmatprep.mubr.msk.f32.mxu1 %vm510_vm2, %v6036_v45  ;;  %v312_v45 = vld [vmem:[#allocation8] sm:$0xf] }
 0x19c   : > { %4732 = vmatprep.mubr.msk.f32.mxu0 %vm510_vm2, %v7172_v50  ;;  %4788 = vmatprep.subr.msk.mxu1 %vm575_vm0, %v312_v45 }
 0x19d   : > { %4789 = vmatpush3.msk.msra.mxu1 %vm575_vm0, %v312_v45 }
 0x19e   : > { %4533 = vmatmul.mubr.msk.f32.gmra.mrb[28].mxu1 %vm510_vm2, %v6039_v25  ;;  %v7174_v25 = vld [vmem:[#allocation60_spill] sm:$0xff] }
 0x19f   : > { %4733 = vmatmul.mubr.msk.f32.gmra.mrb[28].mxu0 %vm510_vm2, %v7173_v12  ;;  %4535 = vmatprep.mubr.msk.f32.mxu1 %vm510_vm2, %v7139_v51 }
 0x1a0   : > { %4735 = vmatprep.mubr.msk.f32.mxu0 %vm510_vm2, %v2575_v29 }
 0x1a2   : > { %4536 = vmatmul.mubr.msk.f32.gmra.mrb[30].mxu1 %vm510_vm2, %v7141_v63 }
 0x1a3   : > { %4736 = vmatmul.mubr.msk.f32.gmra.mrb[30].mxu0 %vm510_vm2, %v2577_v15 }
 0x1a4   : > { %4740 = vmatprep.mubr.msk.f32.mxu0 %vm510_vm2, %v6132_v27  ;;  %v2842_v27 = vrot.slane %v6527_v17, 2 }
 0x1a7   : > { %4741 = vmatmul.mubr.msk.f32.vlgmr.msra.gmra.mrb[0].mxu0 %vm510_vm2, %v6151_v19  ;;  %v2843_v19 = vrot.slane %v6538_v3, 2 }
 0x1a8   : > { %4743 = vmatprep.mubr.msk.f32.mxu0 %vm510_vm2, %v6155_v41  ;;  %v7175_v41 = vld [vmem:[#allocation61_spill] sm:$0xff] }
 0x1ab   : > { %4744 = vmatmul.mubr.msk.f32.gmra.mrb[2].mxu0 %vm510_vm2, %v6174_v28  ;;  %v7176_v28 = vld [vmem:[#allocation62_spill] sm:$0xff] }
 0x1ac   : > { %4746 = vmatprep.mubr.msk.f32.mxu0 %vm510_vm2, %v6178_v61  ;;  %v2845_v61 = vrot.slane %v380_v44, 2 }
 0x1af   : > { %4747 = vmatmul.mubr.msk.f32.gmra.mrb[4].mxu0 %vm510_vm2, %v6191_v38  ;;  %v2844_v38 = vsel %vm1096_vm3, %v2842_v27, %v2843_v19 }
 0x1b0   : > { %4749 = vmatprep.mubr.msk.f32.mxu0 %vm510_vm2, %v6195_v9  ;;  %v7177_v9 = vld [vmem:[#allocation18_spill] sm:$0xff] }
 0x1b3   : > { %4750 = vmatmul.mubr.msk.f32.gmra.mrb[6].mxu0 %vm510_vm2, %v6208_v46  ;;  %v2846_v46 = vsel %vm1096_vm3, %v2843_v19, %v2845_v61 }
 0x1b4   : > { %4752 = vmatprep.mubr.msk.f32.mxu0 %vm510_vm2, %v7131_v59 }
 0x1b7   : > { %4753 = vmatmul.mubr.msk.f32.gmra.mrb[8].mxu0 %vm510_vm2, %v6225_v54 }
 0x1b8   : > { %4755 = vmatprep.mubr.msk.f32.mxu0 %vm510_vm2, %v7132_v37 }
 0x1bb   : > { %4756 = vmatmul.mubr.msk.f32.gmra.mrb[10].mxu0 %vm510_vm2, %v6242_v1 }
 0x1bc   : > { %4758 = vmatprep.mubr.msk.f32.mxu0 %vm510_vm2, %v7133_v8 }
 0x1bf   : > { %4759 = vmatmul.mubr.msk.f32.gmra.mrb[12].mxu0 %vm510_vm2, %v6259_v6 }
 0x1c0   : > { %4761 = vmatprep.mubr.msk.f32.mxu0 %vm510_vm2, %v7134_v13 }
 0x1c3   : > { %4762 = vmatmul.mubr.msk.f32.gmra.mrb[14].mxu0 %vm510_vm2, %v6276_v5 }
 0x1c4   : > { %4764 = vmatprep.mubr.msk.f32.mxu0 %vm510_vm2, %v7135_v10 }
 0x1c7   : > { %4765 = vmatmul.mubr.msk.f32.gmra.mrb[16].mxu0 %vm510_vm2, %v6293_v52 }
 0x1c8   : > { %4767 = vmatprep.mubr.msk.f32.mxu0 %vm510_vm2, %v7136_v60 }
 0x1cb   : > { %4768 = vmatmul.mubr.msk.f32.gmra.mrb[18].mxu0 %vm510_vm2, %v6310_v16 }
 0x1cc   : > { %4770 = vmatprep.mubr.msk.f32.mxu0 %vm510_vm2, %v7137_v49 }
 0x1cf   : > { %4771 = vmatmul.mubr.msk.f32.gmra.mrb[20].mxu0 %vm510_vm2, %v6327_v23 }
 0x1d0   : > { %4773 = vmatprep.mubr.msk.f32.mxu0 %vm510_vm2, %v7138_v58 }
 0x1d3   : > { %4774 = vmatmul.mubr.msk.f32.gmra.mrb[22].mxu0 %vm510_vm2, %v6344_v62 }
 0x1d4   : > { %4776 = vmatprep.mubr.msk.f32.mxu0 %vm510_vm2, %v6348_v43 }
 0x1d7   : > { %4777 = vmatmul.mubr.msk.f32.gmra.mrb[24].mxu0 %vm510_vm2, %v7140_v30 }
 0x1d8   : > { %4779 = vmatprep.mubr.msk.f32.mxu0 %vm510_vm2, %v7174_v25 }
 0x1db   : > { %4780 = vmatmul.mubr.msk.f32.gmra.mrb[26].mxu0 %vm510_vm2, %v7175_v41 }
 0x1dc   : > { %4782 = vmatprep.mubr.msk.f32.mxu0 %vm510_vm2, %v7176_v28 }
 0x1df   : > { %4783 = vmatmul.mubr.msk.f32.gmra.mrb[28].mxu0 %vm510_vm2, %v7177_v9 }
 0x1e0   : > { %4785 = vmatprep.mubr.msk.f32.mxu0 %vm510_vm2, %v2844_v38 }
 0x1e3   : > { %4786 = vmatmul.mubr.msk.f32.gmra.mrb[30].mxu0 %vm510_vm2, %v2846_v46 }
 0x239   : > { %v4492_v54 = vpop.f32.mrb[0].mxu1 }
 0x23a   : > { %v1576_v1 = vpop.f32.mrb[1].mxu1 }
 0x23d   : > { %v4495_v6 = vpop.f32.mrb[2].mxu1 }
 0x23e   : > { %v1586_v5 = vpop.f32.mrb[3].mxu1 }
 0x241   : > { %v4498_v52 = vpop.f32.mrb[4].mxu1 }
 0x242   : > { %v1596_v16 = vpop.f32.mrb[5].mxu1 }
 0x245   : > { %v4501_v23 = vpop.f32.mrb[6].mxu1 }
 0x246   : > { %v1606_v62 = vpop.f32.mrb[7].mxu1 }
 0x249   : > { %v4504_v43 = vpop.f32.mrb[8].mxu1 }
 0x24a   : > { %v6745_v59 = vpop.f32.mrb[9].mxu1 }
 0x24d   : > { %v6747_v37 = vpop.f32.mrb[10].mxu1 }
 0x24e   : > { %v6749_v8 = vpop.f32.mrb[11].mxu1 }
 0x251   : > { %v6751_v13 = vpop.f32.mrb[12].mxu1 }
 0x252   : > { %v6753_v10 = vpop.f32.mrb[13].mxu1 }
 0x255   : > { %v6755_v60 = vpop.f32.mrb[14].mxu1 }
 0x256   : > { %v6757_v49 = vpop.f32.mrb[15].mxu1 }
 0x259   : > { %v6759_v58 = vpop.f32.mrb[16].mxu1 }
 0x25a   : > { %v6761_v51 = vpop.f32.mrb[17].mxu1 }
 0x25d   : > { %v6763_v17 = vpop.f32.mrb[18].mxu1 }
 0x25e   : > { %v6765_v30 = vpop.f32.mrb[19].mxu1 }
 0x261   : > { %v6767_v63 = vpop.f32.mrb[20].mxu1 }
 0x262   : > { %v6769_v3 = vpop.f32.mrb[21].mxu1 }
 0x265   : > { %v6771_v33 = vpop.f32.mrb[22].mxu1 }
 0x266   : > { %v6773_v11 = vpop.f32.mrb[23].mxu1 }
 0x269   : > { %v6775_v42 = vpop.f32.mrb[24].mxu1 }
 0x26a   : > { %v6777_v14 = vpop.f32.mrb[25].mxu1 }
 0x26d   : > { %v6779_v20 = vpop.f32.mrb[26].mxu1 }
 0x26e   : > { %v6781_v21 = vpop.f32.mrb[27].mxu1 }
 0x271   : > { %v6783_v31 = vpop.f32.mrb[28].mxu1 }
 0x272   : > { %v6785_v32 = vpop.f32.mrb[29].mxu1 }
 0x275   : > { %v6787_v39 = vpop.f32.mrb[30].mxu1 }
 0x276   : > { %v6789_v40 = vpop.f32.mrb[31].mxu1 }
 0x27a   : > { %v4742_v48 = vpop.f32.mrb[0].mxu0 }
 0x27b   : > { %v4838_v55 = vadd.f32 %v4742_v48, %v4492_v54  ;;  %v2920_v56 = vpop.f32.mrb[1].mxu0 }
 0x27c   : > { %v4839_v4 = vadd.f32 %v2920_v56, %v1576_v1 }
 0x27d   : > { %v3112_v7 = vadd.f32 %v4838_v55, %v6791_v47 }
 0x27e   : > { %v3111_v18 = vadd.f32 %v4839_v4, %v6791_v47  ;;  %v4745_v22 = vpop.f32.mrb[2].mxu0 }
 0x27f   : > { %v4840_v34 = vadd.f32 %v4745_v22, %v4495_v6  ;;  %v2930_v36 = vpop.f32.mrb[3].mxu0  ;;  %v3144_v24 = vmax.f32 %v3112_v7, 0.0 }
 0x280   : > { %v3143_v53 = vmax.f32 %v3111_v18, 0.0  ;;  %v4841_v57 = vadd.f32 %v2930_v36, %v1586_v5 }
 0x281   : > { %v3114_v26 = vadd.f32 %v4840_v34, %v6791_v47 }
 0x282   : > { %v3113_v35 = vadd.f32 %v4841_v57, %v6791_v47  ;;  %v4748_v44 = vpop.f32.mrb[4].mxu0  ;;  %4790 = vmatprep.mubr.msk.f32.mxu1 %vm510_vm2, %v3143_v53 }
 0x283   : > { %v4842_v2 = vadd.f32 %v4748_v44, %v4498_v52  ;;  %v2940_v50 = vpop.f32.mrb[5].mxu0  ;;  %4791 = vmatmul.mubr.msk.f32.vlgmr.msra.gmra.mrb[32].mxu1 %vm510_vm2, %v3144_v24  ;;  %v3146_v12 = vmax.f32 %v3114_v26, 0.0 }
 0x284   : > { %v3145_v0 = vmax.f32 %v3113_v35, 0.0  ;;  %v4843_v29 = vadd.f32 %v2940_v50, %v1596_v16 }
 0x285   : > { %v3116_v15 = vadd.f32 %v4842_v2, %v6791_v47 }
 0x286   : > { %v3115_v45 = vadd.f32 %v4843_v29, %v6791_v47  ;;  %v4751_v25 = vpop.f32.mrb[6].mxu0  ;;  %4793 = vmatprep.mubr.msk.f32.mxu1 %vm510_vm2, %v3145_v0 }
 0x287   : > { %v4844_v27 = vadd.f32 %v4751_v25, %v4501_v23  ;;  %v2950_v19 = vpop.f32.mrb[7].mxu0  ;;  %4794 = vmatmul.mubr.msk.f32.gmra.mrb[34].mxu1 %vm510_vm2, %v3146_v12  ;;  %v3148_v61 = vmax.f32 %v3116_v15, 0.0 }
 0x288   : > { %v3147_v41 = vmax.f32 %v3115_v45, 0.0  ;;  %v4845_v28 = vadd.f32 %v2950_v19, %v1606_v62 }
 0x289   : > { %v3118_v38 = vadd.f32 %v4844_v27, %v6791_v47 }
 0x28a   : > { %v3117_v9 = vadd.f32 %v4845_v28, %v6791_v47  ;;  %v4754_v46 = vpop.f32.mrb[8].mxu0  ;;  %4796 = vmatprep.mubr.msk.f32.mxu1 %vm510_vm2, %v3147_v41 }
 0x28b   : > { %v4846_v54 = vadd.f32 %v4754_v46, %v4504_v43  ;;  %v2960_v1 = vpop.f32.mrb[9].mxu0  ;;  %4797 = vmatmul.mubr.msk.f32.gmra.mrb[36].mxu1 %vm510_vm2, %v3148_v61  ;;  %v3150_v52 = vmax.f32 %v3118_v38, 0.0 }
 0x28c   : > { %v3149_v6 = vmax.f32 %v3117_v9, 0.0  ;;  %v4847_v5 = vadd.f32 %v2960_v1, %v6745_v59 }
 0x28d   : > { %v3120_v16 = vadd.f32 %v4846_v54, %v6791_v47 }
 0x28e   : > { %v3119_v23 = vadd.f32 %v4847_v5, %v6791_v47  ;;  %v4757_v62 = vpop.f32.mrb[10].mxu0  ;;  %4799 = vmatprep.mubr.msk.f32.mxu1 %vm510_vm2, %v3149_v6 }
 0x28f   : > { %v4848_v48 = vadd.f32 %v4757_v62, %v6747_v37  ;;  %v2970_v55 = vpop.f32.mrb[11].mxu0  ;;  %4800 = vmatmul.mubr.msk.f32.gmra.mrb[38].mxu1 %vm510_vm2, %v3150_v52  ;;  %v3152_v4 = vmax.f32 %v3120_v16, 0.0 }
 0x290   : > { %v3151_v43 = vmax.f32 %v3119_v23, 0.0  ;;  %v4849_v56 = vadd.f32 %v2970_v55, %v6749_v8 }
 0x291   : > { %v3122_v7 = vadd.f32 %v4848_v48, %v6791_v47 }
 0x292   : > { %v3121_v59 = vadd.f32 %v4849_v56, %v6791_v47  ;;  %v4760_v18 = vpop.f32.mrb[12].mxu0  ;;  %4802 = vmatprep.mubr.msk.f32.mxu1 %vm510_vm2, %v3151_v43 }
 0x293   : > { %v4850_v22 = vadd.f32 %v4760_v18, %v6751_v13  ;;  %v2980_v34 = vpop.f32.mrb[13].mxu0  ;;  %4803 = vmatmul.mubr.msk.f32.gmra.mrb[40].mxu1 %vm510_vm2, %v3152_v4  ;;  %v3154_v53 = vmax.f32 %v3122_v7, 0.0 }
 0x294   : > { %v3153_v37 = vmax.f32 %v3121_v59, 0.0  ;;  %v4851_v36 = vadd.f32 %v2980_v34, %v6753_v10 }
 0x295   : > { %v3124_v57 = vadd.f32 %v4850_v22, %v6791_v47 }
 0x296   : > { %v3123_v8 = vadd.f32 %v4851_v36, %v6791_v47  ;;  %v4763_v24 = vpop.f32.mrb[14].mxu0  ;;  %4805 = vmatprep.mubr.msk.f32.mxu1 %vm510_vm2, %v3153_v37 }
 0x297   : > { %v4852_v26 = vadd.f32 %v4763_v24, %v6755_v60  ;;  %v2990_v35 = vpop.f32.mrb[15].mxu0  ;;  %4806 = vmatmul.mubr.msk.f32.gmra.mrb[42].mxu1 %vm510_vm2, %v3154_v53  ;;  %v3156_v2 = vmax.f32 %v3124_v57, 0.0 }
 0x298   : > { %v3155_v13 = vmax.f32 %v3123_v8, 0.0  ;;  %v4853_v44 = vadd.f32 %v2990_v35, %v6757_v49 }
 0x299   : > { %v3126_v50 = vadd.f32 %v4852_v26, %v6791_v47 }
 0x29a   : > { %v3125_v10 = vadd.f32 %v4853_v44, %v6791_v47  ;;  %v4766_v0 = vpop.f32.mrb[16].mxu0  ;;  %4808 = vmatprep.mubr.msk.f32.mxu1 %vm510_vm2, %v3155_v13 }
 0x29b   : > { %v4854_v29 = vadd.f32 %v4766_v0, %v6759_v58  ;;  %v3000_v12 = vpop.f32.mrb[17].mxu0  ;;  %4809 = vmatmul.mubr.msk.f32.gmra.mrb[44].mxu1 %vm510_vm2, %v3156_v2  ;;  %v3158_v45 = vmax.f32 %v3126_v50, 0.0 }
 0x29c   : > { %v3157_v60 = vmax.f32 %v3125_v10, 0.0  ;;  %v4855_v15 = vadd.f32 %v3000_v12, %v6761_v51 }
 0x29d   : > { %v3128_v25 = vadd.f32 %v4854_v29, %v6791_v47 }
 0x29e   : > { %v3127_v49 = vadd.f32 %v4855_v15, %v6791_v47  ;;  %v4769_v27 = vpop.f32.mrb[18].mxu0  ;;  %4811 = vmatprep.mubr.msk.f32.mxu1 %vm510_vm2, %v3157_v60 }
 0x29f   : > { %v4856_v19 = vadd.f32 %v4769_v27, %v6763_v17  ;;  %v3010_v41 = vpop.f32.mrb[19].mxu0  ;;  %4812 = vmatmul.mubr.msk.f32.gmra.mrb[46].mxu1 %vm510_vm2, %v3158_v45  ;;  %v3160_v61 = vmax.f32 %v3128_v25, 0.0 }
 0x2a0   : > { %v3159_v58 = vmax.f32 %v3127_v49, 0.0  ;;  %v4857_v28 = vadd.f32 %v3010_v41, %v6765_v30 }
 0x2a1   : > { %v3130_v38 = vadd.f32 %v4856_v19, %v6791_v47 }
 0x2a2   : > { %v3129_v51 = vadd.f32 %v4857_v28, %v6791_v47  ;;  %v4772_v9 = vpop.f32.mrb[20].mxu0  ;;  %4814 = vmatprep.mubr.msk.f32.mxu1 %vm510_vm2, %v3159_v58 }
 0x2a3   : > { %v4858_v46 = vadd.f32 %v4772_v9, %v6767_v63  ;;  %v3020_v54 = vpop.f32.mrb[21].mxu0  ;;  %4815 = vmatmul.mubr.msk.f32.gmra.mrb[48].mxu1 %vm510_vm2, %v3160_v61  ;;  %v3162_v6 = vmax.f32 %v3130_v38, 0.0 }
 0x2a4   : > { %v3161_v17 = vmax.f32 %v3129_v51, 0.0  ;;  %v4859_v1 = vadd.f32 %v3020_v54, %v6769_v3 }
 0x2a5   : > { %v3132_v5 = vadd.f32 %v4858_v46, %v6791_v47 }
 0x2a6   : > { %v3131_v30 = vadd.f32 %v4859_v1, %v6791_v47  ;;  %v4775_v52 = vpop.f32.mrb[22].mxu0  ;;  %4817 = vmatprep.mubr.msk.f32.mxu1 %vm510_vm2, %v3161_v17 }
 0x2a7   : > { %v4860_v16 = vadd.f32 %v4775_v52, %v6771_v33  ;;  %v3030_v23 = vpop.f32.mrb[23].mxu0  ;;  %4818 = vmatmul.mubr.msk.f32.gmra.mrb[50].mxu1 %vm510_vm2, %v3162_v6  ;;  %v3164_v48 = vmax.f32 %v3132_v5, 0.0 }
 0x2a8   : > { %v3163_v63 = vmax.f32 %v3131_v30, 0.0  ;;  %v4861_v62 = vadd.f32 %v3030_v23, %v6773_v11 }
 0x2a9   : > { %v3134_v55 = vadd.f32 %v4860_v16, %v6791_v47 }
 0x2aa   : > { %v3133_v3 = vadd.f32 %v4861_v62, %v6791_v47  ;;  %v4778_v43 = vpop.f32.mrb[24].mxu0  ;;  %4820 = vmatprep.mubr.msk.f32.mxu1 %vm510_vm2, %v3163_v63 }
 0x2ab   : > { %v4862_v56 = vadd.f32 %v4778_v43, %v6775_v42  ;;  %v3040_v4 = vpop.f32.mrb[25].mxu0  ;;  %4821 = vmatmul.mubr.msk.f32.gmra.mrb[52].mxu1 %vm510_vm2, %v3164_v48  ;;  %v3166_v59 = vmax.f32 %v3134_v55, 0.0 }
 0x2ac   : > { %v3165_v33 = vmax.f32 %v3133_v3, 0.0  ;;  %v4863_v7 = vadd.f32 %v3040_v4, %v6777_v14 }
 0x2ad   : > { %v3136_v18 = vadd.f32 %v4862_v56, %v6791_v47 }
 0x2ae   : > { %v3135_v11 = vadd.f32 %v4863_v7, %v6791_v47  ;;  %v4781_v22 = vpop.f32.mrb[26].mxu0  ;;  %4823 = vmatprep.mubr.msk.f32.mxu1 %vm510_vm2, %v3165_v33 }
 0x2af   : > { %v4864_v34 = vadd.f32 %v4781_v22, %v6779_v20  ;;  %v3050_v37 = vpop.f32.mrb[27].mxu0  ;;  %4824 = vmatmul.mubr.msk.f32.gmra.mrb[54].mxu1 %vm510_vm2, %v3166_v59  ;;  %v3168_v53 = vmax.f32 %v3136_v18, 0.0 }
 0x2b0   : > { %v3167_v42 = vmax.f32 %v3135_v11, 0.0  ;;  %v4865_v36 = vadd.f32 %v3050_v37, %v6781_v21 }
 0x2b1   : > { %v3138_v57 = vadd.f32 %v4864_v34, %v6791_v47 }
 0x2b2   : > { %v3137_v14 = vadd.f32 %v4865_v36, %v6791_v47  ;;  %v4784_v8 = vpop.f32.mrb[28].mxu0  ;;  %4826 = vmatprep.mubr.msk.f32.mxu1 %vm510_vm2, %v3167_v42 }
 0x2b3   : > { %v4866_v24 = vadd.f32 %v4784_v8, %v6783_v31  ;;  %v3060_v26 = vpop.f32.mrb[29].mxu0  ;;  %4827 = vmatmul.mubr.msk.f32.gmra.mrb[56].mxu1 %vm510_vm2, %v3168_v53  ;;  %v3170_v13 = vmax.f32 %v3138_v57, 0.0 }
 0x2b4   : > { %v3169_v20 = vmax.f32 %v3137_v14, 0.0  ;;  %v4867_v35 = vadd.f32 %v3060_v26, %v6785_v32 }
 0x2b5   : > { %v3140_v44 = vadd.f32 %v4866_v24, %v6791_v47 }
 0x2b6   : > { %v3139_v21 = vadd.f32 %v4867_v35, %v6791_v47  ;;  %v4787_v2 = vpop.f32.mrb[30].mxu0  ;;  %4829 = vmatprep.mubr.msk.f32.mxu1 %vm510_vm2, %v3169_v20 }
 0x2b7   : > { %v4868_v50 = vadd.f32 %v4787_v2, %v6787_v39  ;;  %v3070_v10 = vpop.f32.mrb[31].mxu0  ;;  %4830 = vmatmul.mubr.msk.f32.gmra.mrb[58].mxu1 %vm510_vm2, %v3170_v13  ;;  %v3172_v29 = vmax.f32 %v3140_v44, 0.0  ;;  %v6881_v39 = vld [vmem:[#allocation10] ss:$0 sm:$0xff] }
 0x2b8   : > { %v3171_v31 = vmax.f32 %v3139_v21, 0.0  ;;  %v4869_v0 = vadd.f32 %v3070_v10, %v6789_v40 }
 0x2b9   : > { %v3142_v32 = vadd.f32 %v4868_v50, %v6791_v47 }
 0x2ba   : > { %v3141_v12 = vadd.f32 %v4869_v0, %v6791_v47  ;;  %4832 = vmatprep.mubr.msk.f32.mxu1 %vm510_vm2, %v3171_v31 }
 0x2bb   : > { %4833 = vmatmul.mubr.msk.f32.gmra.mrb[60].mxu1 %vm510_vm2, %v3172_v29  ;;  %v3174_v15 = vmax.f32 %v3142_v32, 0.0 }
 0x2bc   : > { %v3173_v60 = vmax.f32 %v3141_v12, 0.0 }
 0x2be   : > { %4835 = vmatprep.mubr.msk.f32.mxu1 %vm510_vm2, %v3173_v60 }
 0x2bf   : > { %4836 = vmatmul.mubr.msk.f32.gmra.mrb[62].mxu1 %vm510_vm2, %v3174_v15 }
 0x356   : > { %v4792_v45 = vpop.f32.mrb[32].mxu1 }
 0x357   : > { %v3346_v40 = vadd.f32 %v4792_v45, %v6881_v39  ;;  %v3340_v25 = vpop.f32.mrb[33].mxu1 }
 0x358   : > { %v3341_v49 = vadd.f32 %v6881_v39, %v3340_v25 }
 0x359   : > { %3500 = vst [vmem:[%s6885_s26 + $0x8] sm:$0xff] %v3346_v40 }
 0x35a   : > { %3499 = vst [vmem:[%s6885_s26] sm:$0xff] %v3341_v49  ;;  %v4795_v47 = vpop.f32.mrb[34].mxu1 }
 0x35b   : > { %v3356_v27 = vadd.f32 %v4795_v47, %v6881_v39  ;;  %v3350_v19 = vpop.f32.mrb[35].mxu1 }
 0x35c   : > { %v3351_v41 = vadd.f32 %v6881_v39, %v3350_v19 }
 0x35d   : > { %3502 = vst [vmem:[%s6885_s26 + $0x18] sm:$0xff] %v3356_v27 }
 0x35e   : > { %3501 = vst [vmem:[%s6885_s26 + $0x10] sm:$0xff] %v3351_v41  ;;  %v4798_v58 = vpop.f32.mrb[36].mxu1 }
 0x35f   : > { %v3366_v28 = vadd.f32 %v4798_v58, %v6881_v39  ;;  %v3360_v61 = vpop.f32.mrb[37].mxu1 }
 0x360   : > { %v3361_v38 = vadd.f32 %v6881_v39, %v3360_v61 }
 0x361   : > { %3504 = vst [vmem:[%s6885_s26 + $0x28] sm:$0xff] %v3366_v28 }
 0x362   : > { %3503 = vst [vmem:[%s6885_s26 + $0x20] sm:$0xff] %v3361_v38  ;;  %v4801_v51 = vpop.f32.mrb[38].mxu1 }
 0x363   : > { %v3376_v9 = vadd.f32 %v4801_v51, %v6881_v39  ;;  %v3370_v46 = vpop.f32.mrb[39].mxu1 }
 0x364   : > { %v3371_v54 = vadd.f32 %v6881_v39, %v3370_v46 }
 0x365   : > { %3506 = vst [vmem:[%s6885_s26 + $0x38] sm:$0xff] %v3376_v9 }
 0x366   : > { %3505 = vst [vmem:[%s6885_s26 + $0x30] sm:$0xff] %v3371_v54  ;;  %v4804_v17 = vpop.f32.mrb[40].mxu1 }
 0x367   : > { %v3386_v1 = vadd.f32 %v4804_v17, %v6881_v39  ;;  %v3380_v6 = vpop.f32.mrb[41].mxu1 }
 0x368   : > { %v3381_v5 = vadd.f32 %v6881_v39, %v3380_v6 }
 0x369   : > { %3508 = vst [vmem:[%s6885_s26 + $0x48] sm:$0xff] %v3386_v1 }
 0x36a   : > { %3507 = vst [vmem:[%s6885_s26 + $0x40] sm:$0xff] %v3381_v5  ;;  %v4807_v30 = vpop.f32.mrb[42].mxu1 }
 0x36b   : > { %v3396_v52 = vadd.f32 %v4807_v30, %v6881_v39  ;;  %v3390_v16 = vpop.f32.mrb[43].mxu1 }
 0x36c   : > { %v3391_v23 = vadd.f32 %v6881_v39, %v3390_v16 }
 0x36d   : > { %3510 = vst [vmem:[%s6885_s26 + $0x58] sm:$0xff] %v3396_v52 }
 0x36e   : > { %3509 = vst [vmem:[%s6885_s26 + $0x50] sm:$0xff] %v3391_v23  ;;  %v4810_v63 = vpop.f32.mrb[44].mxu1 }
 0x36f   : > { %v3406_v62 = vadd.f32 %v4810_v63, %v6881_v39  ;;  %v3400_v48 = vpop.f32.mrb[45].mxu1 }
 0x370   : > { %v3401_v55 = vadd.f32 %v6881_v39, %v3400_v48 }
 0x371   : > { %3512 = vst [vmem:[%s6885_s26 + $0x68] sm:$0xff] %v3406_v62 }
 0x372   : > { %3511 = vst [vmem:[%s6885_s26 + $0x60] sm:$0xff] %v3401_v55  ;;  %v4813_v3 = vpop.f32.mrb[46].mxu1 }
 0x373   : > { %v3416_v43 = vadd.f32 %v4813_v3, %v6881_v39  ;;  %v3410_v56 = vpop.f32.mrb[47].mxu1 }
 0x374   : > { %v3411_v4 = vadd.f32 %v6881_v39, %v3410_v56 }
 0x375   : > { %3514 = vst [vmem:[%s6885_s26 + $0x78] sm:$0xff] %v3416_v43 }
 0x376   : > { %3513 = vst [vmem:[%s6885_s26 + $0x70] sm:$0xff] %v3411_v4  ;;  %v4816_v33 = vpop.f32.mrb[48].mxu1 }
 0x377   : > { %v3426_v7 = vadd.f32 %v4816_v33, %v6881_v39  ;;  %v3420_v59 = vpop.f32.mrb[49].mxu1 }
 0x378   : > { %v3421_v18 = vadd.f32 %v6881_v39, %v3420_v59 }
 0x379   : > { %3516 = vst [vmem:[%s6885_s26 + $0x88] sm:$0xff] %v3426_v7 }
 0x37a   : > { %3515 = vst [vmem:[%s6885_s26 + $0x80] sm:$0xff] %v3421_v18  ;;  %v4819_v11 = vpop.f32.mrb[50].mxu1 }
 0x37b   : > { %v3436_v22 = vadd.f32 %v4819_v11, %v6881_v39  ;;  %v3430_v34 = vpop.f32.mrb[51].mxu1 }
 0x37c   : > { %v3431_v37 = vadd.f32 %v6881_v39, %v3430_v34 }
 0x37d   : > { %3518 = vst [vmem:[%s6885_s26 + $0x98] sm:$0xff] %v3436_v22 }
 0x37e   : > { %3517 = vst [vmem:[%s6885_s26 + $0x90] sm:$0xff] %v3431_v37  ;;  %v4822_v42 = vpop.f32.mrb[52].mxu1 }
 0x37f   : > { %v3446_v36 = vadd.f32 %v4822_v42, %v6881_v39  ;;  %v3440_v53 = vpop.f32.mrb[53].mxu1 }
 0x380   : > { %v3441_v57 = vadd.f32 %v6881_v39, %v3440_v53 }
 0x381   : > { %3520 = vst [vmem:[%s6885_s26 + $0xa8] sm:$0xff] %v3446_v36 }
 0x382   : > { %3519 = vst [vmem:[%s6885_s26 + $0xa0] sm:$0xff] %v3441_v57  ;;  %v4825_v14 = vpop.f32.mrb[54].mxu1 }
 0x383   : > { %v3456_v8 = vadd.f32 %v4825_v14, %v6881_v39  ;;  %v3450_v24 = vpop.f32.mrb[55].mxu1 }
 0x384   : > { %v3451_v26 = vadd.f32 %v6881_v39, %v3450_v24 }
 0x385   : > { %3522 = vst [vmem:[%s6885_s26 + $0xb8] sm:$0xff] %v3456_v8 }
 0x386   : > { %3521 = vst [vmem:[%s6885_s26 + $0xb0] sm:$0xff] %v3451_v26  ;;  %v4828_v20 = vpop.f32.mrb[56].mxu1 }
 0x387   : > { %v3466_v35 = vadd.f32 %v4828_v20, %v6881_v39  ;;  %v3460_v13 = vpop.f32.mrb[57].mxu1 }
 0x388   : > { %v3461_v44 = vadd.f32 %v6881_v39, %v3460_v13 }
 0x389   : > { %3524 = vst [vmem:[%s6885_s26 + $0xc8] sm:$0xff] %v3466_v35 }
 0x38a   : > { %3523 = vst [vmem:[%s6885_s26 + $0xc0] sm:$0xff] %v3461_v44  ;;  %v4831_v21 = vpop.f32.mrb[58].mxu1 }
 0x38b   : > { %v3476_v2 = vadd.f32 %v4831_v21, %v6881_v39  ;;  %v3470_v50 = vpop.f32.mrb[59].mxu1 }
 0x38c   : > { %v3471_v10 = vadd.f32 %v6881_v39, %v3470_v50 }
 0x38d   : > { %3526 = vst [vmem:[%s6885_s26 + $0xd8] sm:$0xff] %v3476_v2 }
 0x38e   : > { %3525 = vst [vmem:[%s6885_s26 + $0xd0] sm:$0xff] %v3471_v10  ;;  %v4834_v31 = vpop.f32.mrb[60].mxu1 }
 0x38f   : > { %v3486_v0 = vadd.f32 %v4834_v31, %v6881_v39  ;;  %v3480_v29 = vpop.f32.mrb[61].mxu1 }
 0x390   : > { %v3481_v32 = vadd.f32 %v6881_v39, %v3480_v29 }
 0x391   : > { %3528 = vst [vmem:[%s6885_s26 + $0xe8] sm:$0xff] %v3486_v0 }
 0x392   : > { %3527 = vst [vmem:[%s6885_s26 + $0xe0] sm:$0xff] %v3481_v32  ;;  %v4837_v12 = vpop.f32.mrb[62].mxu1 }
 0x393   : > { %v3496_v60 = vadd.f32 %v4837_v12, %v6881_v39  ;;  %v3490_v15 = vpop.f32.mrb[63].mxu1 }
 0x394   : > { %v3491_v45 = vadd.f32 %v6881_v39, %v3490_v15 }
 0x395   : > { %3530 = vst [vmem:[%s6885_s26 + $0xf8] sm:$0xff] %v3496_v60 }
 0x396   : > { %3529 = vst [vmem:[%s6885_s26 + $0xf0] sm:$0xff] %v3491_v45 }
 0x397   : > { %5345 = shalt.err (!%p5342_p13)
}
 0x398   : > { %s5346_s6 = scalar_lea.hbm %s6951_s23, 4096  ;;  %s5350_s7 = scalar_lea.hbm %s7005_s5, 8192 }
 0x399   : > { %p5347_p9 = scmp.ne.s32.totalorder %s6951_s23, %s5346_s6  ;;  %p5351_p6 = scmp.lt.u32.totalorder %s6951_s23, %s7005_s5 }
 0x39a   : > { %p5352_p4 = scmp.lt.u32.totalorder %s5350_s7, %s5346_s6  ;;  %p5354_p3 = scmp.lt.u32.totalorder %s5346_s6, %s6951_s23 }
 0x39b   : > { %p5348_p0 = pnand %p5347_p9, %p5609_p10 }
 0x39c   : > { %p5353_p8 = por %p5352_p4, %p5351_p6 }
 0x39d   : > { %p5349_p11 = pneg %p5348_p0 }
 0x39e   : > { %p5355_p5 = por %p5354_p3, %p5353_p8 }
 0x3a0   : > { %p5356_p7 = pnand %p5355_p5, %p5349_p11 }
 0x3a2   : > { %5359 = shalt.err (!%p5356_p7)
}
 0x3a3   : > { %s5418_s30 = smov 128   ;;  %s5419_s8 = smov 8  }
 0x3a4   : > { %5115 = dma.vmem_to_hbm [thread:$0]  (%p5609_p10), %s6953_s10, 4096, %s6951_s23, %s3532_s22, %s5418_s30, %s5418_s30, %s5419_s8  }
 0x3a5 PF: > { %s3560_s12 = sand.u32 1, %s5394_s18   ;;  %p7178_p12 = scmp.ne.s32.totalorder %s7069_s25, 0 }
 0x3a6   : > { %p7179_p2 = scmp.ge.s32.totalorder %s5406_s21, 2  ;;  %s3561_s27 = scalar_lea.sflag [#allocation4], %s3560_s12 }
 0x3a8   : > { %p5135_p1 = pnand %p7179_p2, %p7178_p12 }
 0x3aa   : > { %5389 = dma.done.wait (!%p5135_p1), %s3561_s27, 4096  }
 0x3ab   : > { %5391 = vsyncadd (!%p5135_p1), %s3561_s27, 4294963200  ;;  %p20_p13 = scmp.ge.s32.totalorder %s5599_s14, 4   ;;  %s7180_s18 = smov %s5398_s19 }
 0x3ac   : > { %s7181_s19 = smov %s5402_s20  ;;  %s7182_s20 = smov %s5615_s28 }
 0x3ad   : > { %s7183_s21 = smov %s5599_s14  ;;  %22 = sbr.rel (!%p20_p13) target bundleno = 7 (0x7), region = 109 }
 0x3b4   :  { %3566 = vsyncpa [#allocation3], 1 }
 0x3b5   :  { %3568 = vsyncpa [#allocation3 + $0x1], 1 }
 0x3b6   :  { %3569 = vsyncpa [#allocation6], 1 }
 0x3b7   :  { %3570 = vsyncpa [#allocation9], 1 }
 0x3b8   :  { %3571 = vsyncpa [#allocation4], 1 }
 0x3b9   :  { %3573 = vsyncpa [#allocation4 + $0x1], 1 }

</bundles_post_ra>
